<compile_context>
chip_gen: v7x
topology: tpu7x:2x2x1
jax: 0.10.0
libtpu: 0.0.40
codegen_flags: <defaults>
</compile_context>

<pallas_src>
import functools

import jax
import jax.numpy as jnp
import numpy as np
from jax import lax
from jax.experimental import pallas as pl
from jax.experimental.pallas import tpu as pltpu


def _round_up(a, m):
    return (a + m - 1) // m * m


def _vmem_budget_bytes():
    """75% of physical VMEM (v5e/v6e: 128 MiB, v7x: 64 MiB); safe fallback 64 MiB."""
    cap = 64 * 1024 * 1024
    try:
        info = pltpu.get_tpu_info()
        cap = int(getattr(info, "vmem_capacity_bytes", cap))
    except Exception:
        pass
    return (cap * 3) // 4


def _attn_vmem_bytes(tq, np_pad, c8p, cpv, cp):
    """Rough pass-2 VMEM footprint (2 pipeline buffers per input/output block)."""
    bf16, f32 = 2, 4
    return (2 * tq * c8p * bf16          # q tiles
            + 2 * np_pad * c8p * bf16    # resident K
            + 2 * cpv * np_pad * bf16    # resident V (incl. ones row)
            + 2 * cp * tq * f32          # residual x tiles
            + 2 * cp * tq * f32          # output tiles
            + cpv * tq * f32)            # accumulator scratch


# ----------------------------------------------------------------------------
# Pass 1: fused 1x1 projections.  x tile is channels-major (Cp, TN); one matmul
# computes [q; k; v] = W_all @ x + b_all.  q/k are transposed to position-major
# here (once) so pass 2 only needs MXU-native dot orientations.
# ----------------------------------------------------------------------------
def _proj_kernel(x_ref, w_ref, b_ref, q_ref, k_ref, v_ref, *, c8p):
    xb = x_ref[...].astype(jnp.bfloat16)                                   # (Cp, TN)
    acts = jnp.dot(w_ref[...], xb,
                   preferred_element_type=jnp.float32) + b_ref[...]       # (Ctot, TN)
    q_ref[...] = jnp.transpose(acts[:c8p, :]).astype(jnp.bfloat16)        # (TN, C8p)
    k_ref[...] = jnp.transpose(acts[c8p:2 * c8p, :]).astype(jnp.bfloat16) # (TN, C8p)
    v_ref[...] = acts[2 * c8p:, :].astype(jnp.bfloat16)                   # (Cpv, TN)


# ----------------------------------------------------------------------------
# Pass 2: flash-style position attention + residual, channels-major output.
# K/V are VMEM-resident per batch; kv chunks are sliced in-kernel with pl.ds.
# ----------------------------------------------------------------------------
def _attn_kernel(q_ref, k_ref, v_ref, x_ref, alpha_ref, o_ref, acc_sc, *,
                 tk, n_kv, n_valid, cp, ones_row, masked):
    q = q_ref[...]                                      # (TQ, C8p) bf16
    tq = q.shape[0]
    acc_sc[...] = jnp.zeros_like(acc_sc)                # (Cpv, TQ) f32

    def body(j, m_prev):                                # m_prev: (1, TQ) running max
        off = pl.multiple_of(j * tk, tk)
        kc = k_ref[pl.ds(off, tk), :]                   # (TK, C8p) bf16
        vc = v_ref[:, pl.ds(off, tk)]                   # (Cpv, TK) bf16
        # s[j, i] = k_j . q_i  (keys on sublanes, queries on lanes) -> NT dot.
        s = lax.dot_general(kc, q, (((1,), (1,)), ((), ())),
                            preferred_element_type=jnp.float32)            # (TK, TQ)
        if masked:  # static: only emitted when N % TK != 0
            key_idx = lax.broadcasted_iota(jnp.int32, s.shape, 0) + off
            s = jnp.where(key_idx < n_valid, s, -1e30)
        m_new = jnp.maximum(m_prev, jnp.max(s, axis=0, keepdims=True))     # (1, TQ)
        p = jnp.exp(s - m_new)                                             # (TK, TQ)
        rescale = jnp.exp(m_prev - m_new)                                  # (1, TQ)
        pv = lax.dot_general(vc, p.astype(jnp.bfloat16),                   # NN dot
                             (((1,), (0,)), ((), ())),
                             preferred_element_type=jnp.float32)           # (Cpv, TQ)
        acc_sc[...] = rescale * acc_sc[...] + pv
        return m_new

    m0 = jnp.full((1, tq), -1e30, dtype=jnp.float32)
    lax.fori_loop(0, n_kv, body, m0)

    acc = acc_sc[...]
    # Softmax denominator rides in the "ones" channel row of V (no XLU row-sum).
    inv_l = pl.reciprocal(acc[ones_row:ones_row + 1, :], approx=True)      # (1, TQ)
    e = acc[:cp, :] * inv_l                                                # (Cp, TQ)
    o_ref[...] = (alpha_ref[0] * e + x_ref[...]).astype(o_ref.dtype)


# ----------------------------------------------------------------------------
# Wrapper
# ----------------------------------------------------------------------------
def position_attention(x_nchw, w_b, b_b, w_c, b_c, w_d, b_d, alpha):
    """x_nchw: (B, C, H, W) f32. Conv weights in PyTorch (Cout, Cin) layout."""
    B, C, H, W = x_nchw.shape
    N = H * W
    C8 = w_b.shape[0]

    Cp = _round_up(C, 128)                 # lane/sublane-dense channels
    C8p = _round_up(C8, 128)               # q/k contraction dim
    ones_row = _round_up(C, 8)             # 8-aligned padding row carrying the denom
    Cpv = _round_up(ones_row + 1, 128)     # v channels incl. the ones row

    # Tile selection (TK | TQ; all multiples of 128 -> bf16 / v5e friendly).
    TK = min(256, _round_up(N, 128))
    TQ = min(512, _round_up(N, TK))
    # v7x megacore: keep the parallel grid extent B * n_q_tiles >= 2 if possible.
    while B * (_round_up(N, TQ) // TQ) < 2 and TQ > TK:
        TQ //= 2
    # Per-generation VMEM budget (~48 MiB on v7x, ~96 MiB on v5e/v6e).
    budget = _vmem_budget_bytes()
    while _attn_vmem_bytes(TQ, _round_up(N, TQ), C8p, Cpv, Cp) > budget and TQ > TK:
        TQ //= 2
    # TODO(synk): add a streamed (grid-tiled) K/V fallback for the case where
    # per-batch K/V residency alone exceeds the VMEM budget (huge H*W on v7x).
    Np = _round_up(N, TQ)
    TN = TQ
    n_tiles = Np // TN
    n_kv = int(pl.cdiv(N, TK))
    masked = (N % TK) != 0
    vmem_limit = int(budget)

    # Channels-major, zero-padded input: (B, C, N) -> (B, Cp, Np).  No transpose.
    x_flat = x_nchw.reshape(B, C, N).astype(jnp.float32)
    x_p = jnp.pad(x_flat, ((0, 0), (0, Cp - C), (0, Np - N)))

    # Fused projection weights: rows [0,C8)=W_b, [C8p,C8p+C8)=W_c,
    # [2*C8p,2*C8p+C)=W_d, plus a zero weight row whose bias is 1.0 (the "ones"
    # channel of V that accumulates the softmax denominator on the MXU).
    Ctot = 2 * C8p + Cpv
    w_all = jnp.zeros((Ctot, Cp), jnp.float32)
    w_all = w_all.at[:C8, :C].set(jnp.asarray(w_b, jnp.float32))
    w_all = w_all.at[C8p:C8p + C8, :C].set(jnp.asarray(w_c, jnp.float32))
    w_all = w_all.at[2 * C8p:2 * C8p + C, :C].set(jnp.asarray(w_d, jnp.float32))
    w_all = w_all.astype(jnp.bfloat16)

    b_all = jnp.zeros((Ctot,), jnp.float32)
    b_all = b_all.at[:C8].set(jnp.asarray(b_b, jnp.float32))
    b_all = b_all.at[C8p:C8p + C8].set(jnp.asarray(b_c, jnp.float32))
    b_all = b_all.at[2 * C8p:2 * C8p + C].set(jnp.asarray(b_d, jnp.float32))
    b_all = b_all.at[2 * C8p + ones_row].set(1.0)
    b_all = b_all.reshape(Ctot, 1)

    alpha_arr = jnp.asarray(alpha, jnp.float32).reshape(1)

    # ---- Pass 1: fused projections; q/k position-major, v channels-major ----
    q, k, v = pl.pallas_call(
        functools.partial(_proj_kernel, c8p=C8p),
        out_shape=(
            jax.ShapeDtypeStruct((B, Np, C8p), jnp.bfloat16),
            jax.ShapeDtypeStruct((B, Np, C8p), jnp.bfloat16),
            jax.ShapeDtypeStruct((B, Cpv, Np), jnp.bfloat16),
        ),
        grid=(B, n_tiles),
        in_specs=[
            pl.BlockSpec((None, Cp, TN), lambda b, i: (b, 0, i)),   # x tile
            pl.BlockSpec((Ctot, Cp), lambda b, i: (0, 0)),          # fused W
            pl.BlockSpec((Ctot, 1), lambda b, i: (0, 0)),           # fused bias
        ],
        out_specs=(
            pl.BlockSpec((None, TN, C8p), lambda b, i: (b, i, 0)),
            pl.BlockSpec((None, TN, C8p), lambda b, i: (b, i, 0)),
            pl.BlockSpec((None, Cpv, TN), lambda b, i: (b, 0, i)),
        ),
        compiler_params=pltpu.CompilerParams(
            dimension_semantics=("parallel", "parallel"),
            vmem_limit_bytes=vmem_limit,
        ),
    )(x_p, w_all, b_all)

    # ---- Pass 2: flash attention with per-batch K/V residency + residual ----
    attn_kernel = functools.partial(
        _attn_kernel, tk=TK, n_kv=n_kv, n_valid=N, cp=Cp,
        ones_row=ones_row, masked=masked)
    out_p = pl.pallas_call(
        attn_kernel,
        out_shape=jax.ShapeDtypeStruct((B, Cp, Np), jnp.float32),
        grid=(B, Np // TQ),
        in_specs=[
            pl.BlockSpec((None, TQ, C8p), lambda b, i: (b, i, 0)),   # q tile
            pl.BlockSpec((None, Np, C8p), lambda b, i: (b, 0, 0)),   # K resident/batch
            pl.BlockSpec((None, Cpv, Np), lambda b, i: (b, 0, 0)),   # V resident/batch
            pl.BlockSpec((None, Cp, TQ), lambda b, i: (b, 0, i)),    # residual x
            pl.BlockSpec(memory_space=pltpu.MemorySpace.SMEM),       # alpha scalar
        ],
        out_specs=pl.BlockSpec((None, Cp, TQ), lambda b, i: (b, 0, i)),
        scratch_shapes=[pltpu.VMEM((Cpv, TQ), jnp.float32)],
        input_output_aliases={3: 0},                                 # out aliases x_p
        compiler_params=pltpu.CompilerParams(
            dimension_semantics=("parallel", "parallel"),
            vmem_limit_bytes=vmem_limit,
        ),
    )(q, k, v, x_p, alpha_arr)

    return out_p[:, :C, :N].reshape(B, C, H, W)


# ----------------------------------------------------------------------------
# Plain-JAX reference (mirror of the PyTorch forward) for correctness check.
# ----------------------------------------------------------------------------
def _reference(x, w_b, b_b, w_c, b_c, w_d, b_d, alpha):
    B, C, H, W = x.shape
    N = H * W

    def conv1x1(x, w, b):
        return jnp.einsum('bchw,oc->bohw', x, w) + b[None, :, None, None]

    feat_b = conv1x1(x, w_b, b_b).reshape(B, -1, N).transpose(0, 2, 1)   # (B, N, C8)
    feat_c = conv1x1(x, w_c, b_c).reshape(B, -1, N)                      # (B, C8, N)
    att = jax.nn.softmax(jnp.einsum('bnc,bcm->bnm', feat_b, feat_c), axis=-1)
    feat_d = conv1x1(x, w_d, b_d).reshape(B, -1, N)                      # (B, C, N)
    feat_e = jnp.einsum('bcn,bmn->bcm', feat_d, att).reshape(B, C, H, W)
    return alpha * feat_e + x


def _run_case(key, B, C, H, W, rtol=2e-2, atol=2e-2):
    C8 = max(C // 8, 1)
    kx, kwb, kbb, kwc, kbc, kwd, kbd = jax.random.split(key, 7)

    x = jax.random.normal(kx, (B, C, H, W), dtype=jnp.float32)
    w_b = 0.1 * jax.random.normal(kwb, (C8, C), dtype=jnp.float32)
    b_b = 0.1 * jax.random.normal(kbb, (C8,), dtype=jnp.float32)
    w_c = 0.1 * jax.random.normal(kwc, (C8, C), dtype=jnp.float32)
    b_c = 0.1 * jax.random.normal(kbc, (C8,), dtype=jnp.float32)
    w_d = 0.1 * jax.random.normal(kwd, (C, C), dtype=jnp.float32)
    b_d = 0.1 * jax.random.normal(kbd, (C,), dtype=jnp.float32)
    # nn.Parameter(torch.zeros(1)) initializes alpha to 0; use a nonzero value so
    # the attention path is actually exercised.
    alpha = jnp.float32(0.5)

    out = position_attention(x, w_b, b_b, w_c, b_c, w_d, b_d, alpha)
    out = jax.block_until_ready(out)

    ref = _reference(x, w_b, b_b, w_c, b_c, w_d, b_d, alpha)
    # bf16 MXU inputs (f32 accumulation) + approx reciprocal => looser tolerance
    # than a pure-f32 kernel; the residual path stays exact f32.
    np.testing.assert_allclose(np.asarray(out), np.asarray(ref), rtol=rtol, atol=atol)


if __name__ == "__main__":
    # Aligned case (N is a multiple of the kv chunk) and a ragged case that
    # exercises the padding / key-masking path.
    _run_case(jax.random.PRNGKey(0), B=2, C=16, H=16, W=16)
    _run_case(jax.random.PRNGKey(1), B=1, C=16, H=10, W=10)
    print("KERNEL_OK")
</pallas_src>

<mosaic_0001>
module attributes {stable_mosaic.version = 11 : i64} {
  func.func @_proj_kernel(%arg0: i32, %arg1: i32, %arg2: memref<1x128x256xf32, #tpu.memory_space<vmem>>, %arg3: memref<384x128xbf16, #tpu.memory_space<vmem>>, %arg4: memref<384x1xf32, #tpu.memory_space<vmem>>, %arg5: memref<1x256x128xbf16, #tpu.memory_space<vmem>>, %arg6: memref<1x256x128xbf16, #tpu.memory_space<vmem>>, %arg7: memref<1x128x256xbf16, #tpu.memory_space<vmem>>) attributes {dimension_semantics = [#tpu.dimension_semantics<parallel>, #tpu.dimension_semantics<parallel>], iteration_bounds = array<i64: 2, 1>, scalar_prefetch = 0 : i64, scratch_operands = 0 : i64, tpu.core_type = #tpu.core_type<tc>, window_params = [{transform_indices = @transform_0, window_bounds = array<i64: 1, 128, 256>}, {pipeline_mode = #tpu.pipeline_mode<synchronous>, transform_indices = @transform_1, window_bounds = array<i64: 384, 128>}, {pipeline_mode = #tpu.pipeline_mode<synchronous>, transform_indices = @transform_2, window_bounds = array<i64: 384, 1>}, {transform_indices = @transform_3, window_bounds = array<i64: 1, 256, 128>}, {transform_indices = @transform_4, window_bounds = array<i64: 1, 256, 128>}, {transform_indices = @transform_5, window_bounds = array<i64: 1, 128, 256>}]} {
    %c0 = arith.constant 0 : index
    %c0_0 = arith.constant 0 : index
    %c0_1 = arith.constant 0 : index
    %0 = vector.load %arg2[%c0, %c0_0, %c0_1] : memref<1x128x256xf32, #tpu.memory_space<vmem>>, vector<1x128x256xf32>
    %1 = vector.shape_cast %0 : vector<1x128x256xf32> to vector<128x256xf32>
    %2 = arith.truncf %1 : vector<128x256xf32> to vector<128x256xbf16>
    %c0_2 = arith.constant 0 : index
    %c0_3 = arith.constant 0 : index
    %3 = vector.load %arg3[%c0_2, %c0_3] : memref<384x128xbf16, #tpu.memory_space<vmem>>, vector<384x128xbf16>
    %cst = arith.constant dense<0.000000e+00> : vector<384x256xf32>
    %4 = tpu.matmul %3, %2, %cst {dimension_numbers = #tpu.dot_dimension_numbers<[1], [0], [0], [1], [0, 0, 1, 1], [], []>} : vector<384x128xbf16>, vector<128x256xbf16>, vector<384x256xf32> -> vector<384x256xf32>
    %c0_4 = arith.constant 0 : index
    %c0_5 = arith.constant 0 : index
    %5 = vector.load %arg4[%c0_4, %c0_5] : memref<384x1xf32, #tpu.memory_space<vmem>>, vector<384x1xf32>
    %6 = vector.broadcast %5 : vector<384x1xf32> to vector<384x256xf32>
    %7 = arith.addf %4, %6 : vector<384x256xf32>
    %8 = vector.extract_strided_slice %7 {offsets = [0, 0], sizes = [128, 256], strides = [1, 1]} : vector<384x256xf32> to vector<128x256xf32>
    %9 = tpu.transpose %8, [1, 0] : vector<128x256xf32> -> vector<256x128xf32>
    %10 = arith.truncf %9 : vector<256x128xf32> to vector<256x128xbf16>
    %c0_6 = arith.constant 0 : index
    %c0_7 = arith.constant 0 : index
    %c0_8 = arith.constant 0 : index
    %11 = vector.load %arg5[%c0_6, %c0_7, %c0_8] : memref<1x256x128xbf16, #tpu.memory_space<vmem>>, vector<1x256x128xbf16>
    %12 = vector.shape_cast %11 : vector<1x256x128xbf16> to vector<256x128xbf16>
    %13 = vector.shape_cast %10 : vector<256x128xbf16> to vector<1x256x128xbf16>
    tpu.vector_store %arg5[%c0_6, %c0_7, %c0_8], %13 {strides = array<i32>} : memref<1x256x128xbf16, #tpu.memory_space<vmem>>, vector<1x256x128xbf16>,
    %14 = vector.extract_strided_slice %7 {offsets = [128, 0], sizes = [128, 256], strides = [1, 1]} : vector<384x256xf32> to vector<128x256xf32>
    %15 = tpu.transpose %14, [1, 0] : vector<128x256xf32> -> vector<256x128xf32>
    %16 = arith.truncf %15 : vector<256x128xf32> to vector<256x128xbf16>
    %c0_9 = arith.constant 0 : index
    %c0_10 = arith.constant 0 : index
    %c0_11 = arith.constant 0 : index
    %17 = vector.load %arg6[%c0_9, %c0_10, %c0_11] : memref<1x256x128xbf16, #tpu.memory_space<vmem>>, vector<1x256x128xbf16>
    %18 = vector.shape_cast %17 : vector<1x256x128xbf16> to vector<256x128xbf16>
    %19 = vector.shape_cast %16 : vector<256x128xbf16> to vector<1x256x128xbf16>
    tpu.vector_store %arg6[%c0_9, %c0_10, %c0_11], %19 {strides = array<i32>} : memref<1x256x128xbf16, #tpu.memory_space<vmem>>, vector<1x256x128xbf16>,
    %20 = vector.extract_strided_slice %7 {offsets = [256, 0], sizes = [128, 256], strides = [1, 1]} : vector<384x256xf32> to vector<128x256xf32>
    %21 = arith.truncf %20 : vector<128x256xf32> to vector<128x256xbf16>
    %c0_12 = arith.constant 0 : index
    %c0_13 = arith.constant 0 : index
    %c0_14 = arith.constant 0 : index
    %22 = vector.load %arg7[%c0_12, %c0_13, %c0_14] : memref<1x128x256xbf16, #tpu.memory_space<vmem>>, vector<1x128x256xbf16>
    %23 = vector.shape_cast %22 : vector<1x128x256xbf16> to vector<128x256xbf16>
    %24 = vector.shape_cast %21 : vector<128x256xbf16> to vector<1x128x256xbf16>
    tpu.vector_store %arg7[%c0_12, %c0_13, %c0_14], %24 {strides = array<i32>} : memref<1x128x256xbf16, #tpu.memory_space<vmem>>, vector<1x128x256xbf16>,
    return
  }
  func.func @transform_0(%arg0: i32, %arg1: i32) -> (i32, i32, i32) {
    %c0_i32 = arith.constant 0 : i32
    %c0_i32_0 = arith.constant 0 : i32
    return %arg0, %c0_i32, %arg1 : i32, i32, i32
  }
  func.func @transform_1(%arg0: i32, %arg1: i32) -> (i32, i32) {
    %c0_i32 = arith.constant 0 : i32
    %c0_i32_0 = arith.constant 0 : i32
    %c0_i32_1 = arith.constant 0 : i32
    return %c0_i32, %c0_i32_0 : i32, i32
  }
  func.func @transform_2(%arg0: i32, %arg1: i32) -> (i32, i32) {
    %c0_i32 = arith.constant 0 : i32
    %c0_i32_0 = arith.constant 0 : i32
    %c0_i32_1 = arith.constant 0 : i32
    return %c0_i32, %c0_i32_0 : i32, i32
  }
  func.func @transform_3(%arg0: i32, %arg1: i32) -> (i32, i32, i32) {
    %c0_i32 = arith.constant 0 : i32
    %c0_i32_0 = arith.constant 0 : i32
    return %arg0, %arg1, %c0_i32 : i32, i32, i32
  }
  func.func @transform_4(%arg0: i32, %arg1: i32) -> (i32, i32, i32) {
    %c0_i32 = arith.constant 0 : i32
    %c0_i32_0 = arith.constant 0 : i32
    return %arg0, %arg1, %c0_i32 : i32, i32, i32
  }
  func.func @transform_5(%arg0: i32, %arg1: i32) -> (i32, i32, i32) {
    %c0_i32 = arith.constant 0 : i32
    %c0_i32_0 = arith.constant 0 : i32
    return %arg0, %c0_i32, %arg1 : i32, i32, i32
  }
}

</mosaic_0001>

<bundles_post_ra>
// kernel: tpu_custom_call.1
= control target key start
LH: loop header
LB: loop body
LE: loop exit
PB: predicated region body
PF: predicated region fallthrough
CT: control target
= control target key end

     0   :  { %11 = vsyncpa [#allocation3], 0  ;;  %s3572_s0 = inlined_call_operand.hbm [shape: f32[2,128,256], index: 0, kind: input, shape index: {}]   ;;  %s3573_s1 = inlined_call_operand.vmem [shape: bf16[384,128], index: 1, kind: input, shape index: {}]   ;;  %s3574_s2 = inlined_call_operand.vmem [shape: f32[384,1], index: 2, kind: input, shape index: {}]   ;;  %s3575_s3 = inlined_call_operand.hbm [shape: bf16[2,256,128], index: 3, kind: output, shape index: {0}]   ;;  %s3576_s4 = inlined_call_operand.hbm [shape: bf16[2,256,128], index: 4, kind: output, shape index: {1}]   ;;  %s3577_s5 = inlined_call_operand.hbm [shape: bf16[2,128,256], index: 5, kind: output, shape index: {2}]  }
   0x1   :  { %13 = vsyncpa [#allocation3 + $0x1], 0 }
   0x2   :  { %14 = vsyncpa [#allocation4], 0 }
   0x3   :  { %16 = vsyncpa [#allocation4 + $0x1], 0 }
   0x4   :  { %17 = vsyncpa [#allocation7], 0 }
   0x5   :  { %19 = vsyncpa [#allocation7 + $0x1], 0  ;;  %s2826_s18 = smov 0   ;;  %s2828_s19 = smov 0  }
   0x6   :  { %s2830_s20 = smov 0   ;;  %s2832_s21 = smov 0  }
   0x7   :  { %s2834_s22 = smov 0   ;;  %s2836_s23 = smov 0  }
   0x8 LB: > { %s2857_s24 = sadd.s32 4294967295, %s2783_s23   ;;  %s3579_s25 = sadd.s32 4294967294, %s2783_s23   ;;  %s2783_s23 = sphi %s2836_s23, %s25_s23   ;;  %s2779_s22 = sphi %s2834_s22, %s3594_s22   ;;  %s2775_s21 = sphi %s2832_s21, %s3593_s21   ;;  %s2771_s20 = sphi %s2830_s20, %s3592_s20   ;;  %s2767_s19 = sphi %s2828_s19, %s3591_s19   ;;  %s2763_s18 = sphi %s2826_s18, %s3590_s18  }
   0x9   : > { %s37_s26 = sadd.s32 1, %s2779_s22  ;;  %s46_s27 = sadd.s32 1, %s2771_s20 }
   0xa   : > { %p39_p0 = scmp.ge.s32.totalorder %s37_s26, 2  ;;  %p53_p1 = scmp.ne.s32.totalorder %s2771_s20, %s2767_s19 }
   0xb   : > { %p54_p2 = scmp.eq.s32.totalorder %s2783_s23, 0  ;;  %p59_p3 = scmp.ne.s32.totalorder %s2767_s19, %s2763_s18 }
   0xc   : > { %s3596_s26 = smov (%p39_p0, %s37_s26), 0  ;;  %p60_p5 = scmp.eq.s32.totalorder %s2857_s24, 0 }
   0xd   : > { %p2869_p4 = por %p54_p2, %p53_p1  ;;  %s41_s29 = ssub.s32 %s2779_s22, %s3596_s26 }
   0xe   : > { %p127_p6 = scmp.eq.s32.totalorder %s2857_s24, 1  ;;  %p44_p7 = scmp.eq.s32.totalorder %s41_s29, 0 }
   0xf   : > { %p2877_p8 = por %p60_p5, %p59_p3  ;;  %p133_p10 = scmp.eq.s32.totalorder %s3579_s25, 1 }
  0x10   : > { %p2881_p9 = por %p127_p6, %p53_p1  ;;  %p2304_p13 = scmp.lt.s32.totalorder %s2783_s23, 2 }
  0x11   : > { %s2888_s7 = scalar_select %p44_p7, %s2771_s20, %s46_s27  }
  0x12   : > { %s3582_s6 = scalar_select %p2881_p9, 1, 0 }
  0x13   : > { %p2890_p11 = por %p133_p10, %p59_p3  ;;  %s215_s9 = sand.u32 1, %s2771_s20  }
  0x14   : > { %s1869_s10 = sshll.u32 %s215_s9, 8  ;;  %s1992_s11 = sshll.u32 %s2779_s22, 12 }
  0x15   : > { %s3583_s8 = scalar_select %p2890_p11, 1, 0 }
  0x16   : > { %s2901_s14 = scalar_lea.hbm %s3572_s0, %s1992_s11  ;;  %s219_s15 = scalar_lea.vmem [#allocation2], %s1869_s10 }
  0x17   : > { %s228_s16 = sshll.u32 %s219_s15, 4  ;;  %p2907_p0 = pnand %p2304_p13, %p2869_p4  ;;  %s2903_s16 = int_to_ptr.vmem [resolvable:$true] %s228_s16 }
  0x18   : > { %s2912_s27 = scalar_lea.sflag [#allocation3], %s215_s9  ;;  %s2611_s29 = scalar_lea.hbm %s2901_s14, 4096 }
  0x19   : > { %p2612_p2 = scmp.ne.s32.totalorder %s2901_s14, %s2611_s29  ;;  %p2613_p3 = pneg %p2907_p0 }
  0x1a   : > { %s2616_s28 = scalar_lea.hbm %s3572_s0, 8192  ;;  %p2617_p4 = scmp.lt.u32.totalorder %s2901_s14, %s3572_s0 }
  0x1b   : > { %p2614_p5 = pnand %p2613_p3, %p2612_p2  ;;  %p2618_p7 = scmp.lt.u32.totalorder %s2616_s28, %s2611_s29 }
  0x1c   : > { %p2620_p13 = scmp.lt.u32.totalorder %s2611_s29, %s2901_s14 }
  0x1d   : > { %p2615_p6 = pneg %p2614_p5  ;;  %p2619_p10 = por %p2618_p7, %p2617_p4 }
  0x1f   : > { %p2621_p12 = por %p2620_p13, %p2619_p10 }
  0x21   : > { %p2622_p1 = pnand %p2621_p12, %p2615_p6 }
  0x23   : > { %2625 = shalt.err (!%p2622_p1)
}
  0x24   : > { %s2626_s9 = scalar_lea.vmem %s2903_s16, 4096  ;;  %s2785_s15 = smov [#allocation2]  }
  0x25   : > { %p2627_p2 = scmp.ne.s32.totalorder %s2903_s16, %s2626_s9  ;;  %s2631_s10 = sshll.u32 %s2785_s15, 4  ;;  %s2632_s10 = int_to_ptr.vmem [resolvable:$false] %s2631_s10 }
  0x26   : > { %s2633_s11 = scalar_lea.vmem %s2632_s10, 8192  ;;  %p2634_p9 = scmp.lt.s32.totalorder %s2903_s16, %s2632_s10 }
  0x27   : > { %p2629_p5 = pnand %p2627_p2, %p2613_p3  ;;  %p2635_p4 = scmp.lt.s32.totalorder %s2633_s11, %s2626_s9 }
  0x29   : > { %p2630_p11 = pneg %p2629_p5  ;;  %p2636_p7 = por %p2635_p4, %p2634_p9 }
  0x2b   : > { %p2637_p10 = pnand %p2636_p7, %p2630_p11 }
  0x2d   : > { %2640 = shalt.err (!%p2637_p10)
}
  0x2e   : > { %s2786_s29 = smov 256   ;;  %s2787_s28 = smov 16  }
  0x2f   : > { %2293 = dma.hbm_to_vmem [thread:$0]  (!%p2907_p0), %s2901_s14, 4096, %s2903_s16, %s2912_s27, %s2786_s29, %s2786_s29, %s2787_s28  }
  0x30   : > { %p236_p12 = scmp.lt.s32.totalorder %s2783_s23, 3  ;;  %p3585_p1 = scmp.ge.s32.totalorder %s2783_s23, 1 }
  0x32   : > { %p237_p3 = pnand %p3585_p1, %p236_p12 }
  0x33   : > { %s2944_s12 = sand.u32 (!%p237_p3), 1, %s2767_s19  }
  0x34   : > { %240 = sbr.rel (%p237_p3) target bundleno = 616 (0x268), region = 32  ;;  %s1873_s13 = sshll.u32 (!%p237_p3), %s2944_s12, 8 }
  0x35   : > { %s243_s9 = scalar_lea.sflag (!%p237_p3), [#allocation3], %s2944_s12  ;;  %s2948_s15 = scalar_lea.vmem (!%p237_p3), [#allocation2], %s1873_s13 }
  0x3b   : > { %2750 = dma.done.wait (%p2877_p8), %s243_s9, 4096  }
  0x3c   : > { %2752 = vsyncadd (%p2877_p8), %s243_s9, 4294963200  ;;  %v2788_v0 = vmov 0   ;;  %v289_v1 = vld [vmem:[%s2948_s15 + $0x8] sm:$0xff]  ;;  %v291_v2 = vld [vmem:[%s2948_s15 + $0x18] sm:$0xff]  ;;  %s3325_s14 = sshll.u32 %s2944_s12, 7  ;;  %s3420_s27 = sshll.u32 %s2775_s21, 11 }
  0x3d   : > { %848 = vmatprep.mubr.bf16.mxu0 %v2788_v0  ;;  %968 = vmatprep.mubr.bf16.mxu1 %v2788_v0  ;;  %v288_v3 = vld [vmem:[%s2948_s15] sm:$0xff]  ;;  %v321_v4 = vpack.c.bf16 %v291_v2, %v289_v1  ;;  %v290_v5 = vld [vmem:[%s2948_s15 + $0x10] sm:$0xff]  ;;  %v293_v6 = vld [vmem:[%s2948_s15 + $0x28] sm:$0xff]  ;;  %s3332_s16 = scalar_lea.vmem [#allocation8], %s3325_s14  ;;  %s3403_s17 = scalar_lea.vmem [#allocation5], %s3325_s14 }
  0x3e   : > { %2361 = vset.pattern.permute.xlu0 %v2788_v0  ;;  %2362 = vset.pattern.permute.xlu1 %v2788_v0  ;;  %v295_v7 = vld [vmem:[%s2948_s15 + $0x38] sm:$0xff]  ;;  %v320_v8 = vpack.c.bf16 %v290_v5, %v288_v3  ;;  %v292_v10 = vld [vmem:[%s2948_s15 + $0x20] sm:$0xff]  ;;  %v294_v11 = vld [vmem:[%s2948_s15 + $0x30] sm:$0xff]  ;;  %s3427_s29 = scalar_lea.hbm %s3575_s3, %s3420_s27  ;;  %s1650_s21 = scalar_lea.sflag [#allocation4], %s2944_s12 }
  0x3f   : > { %v323_v9 = vpack.c.bf16 %v295_v7, %v293_v6  ;;  %v297_v12 = vld [vmem:[%s2948_s15 + $0x48] sm:$0xff]  ;;  %816 = vmatprep.subr.bf16.mxu0 %v321_v4  ;;  %2266 = vmatprep.subr.bf16.mxu1 %v321_v4  ;;  %v299_v13 = vld [vmem:[%s2948_s15 + $0x58] sm:$0xff]  ;;  %v322_v14 = vpack.c.bf16 %v294_v11, %v292_v10  ;;  %v296_v16 = vld [vmem:[%s2948_s15 + $0x40] sm:$0xff]  ;;  %p3586_p9 = scmp.ne.s32.totalorder %s3582_s6, 0  ;;  %s2789_s13 = smov [#allocation5]  }
  0x40   : > { %817 = vmatpush1.bf16.msra.mxu0 %v320_v8  ;;  %2274 = vmatpush1.bf16.msra.mxu1 %v320_v8  ;;  %v325_v15 = vpack.c.bf16 %v299_v13, %v297_v12  ;;  %v298_v17 = vld [vmem:[%s2948_s15 + $0x50] sm:$0xff]  ;;  %v301_v18 = vld [vmem:[%s2948_s15 + $0x68] sm:$0xff]  ;;  %v303_v19 = vld [vmem:[%s2948_s15 + $0x78] sm:$0xff]  ;;  %s2645_s9 = sshll.u32 %s2789_s13, 4  ;;  %s2646_s9 = int_to_ptr.vmem [resolvable:$false] %s2645_s9 }
  0x41   : > { %818 = vmatprep.subr.bf16.mxu0 %v323_v9  ;;  %2267 = vmatprep.subr.bf16.mxu1 %v323_v9  ;;  %v324_v20 = vpack.c.bf16 %v298_v17, %v296_v16  ;;  %v327_v21 = vpack.c.bf16 %v303_v19, %v301_v18  ;;  %v300_v22 = vld [vmem:[%s2948_s15 + $0x60] sm:$0xff]  ;;  %v302_v23 = vld [vmem:[%s2948_s15 + $0x70] sm:$0xff]  ;;  %v305_v24 = vld [vmem:[%s2948_s15 + $0x88] sm:$0xff]  ;;  %s2647_s30 = scalar_lea.vmem %s2646_s9, 4096 }
  0x42   : > { %v307_v25 = vld [vmem:[%s2948_s15 + $0x98] sm:$0xff]  ;;  %v304_v26 = vld [vmem:[%s2948_s15 + $0x80] sm:$0xff]  ;;  %v326_v27 = vpack.c.bf16 %v302_v23, %v300_v22  ;;  %v306_v28 = vld [vmem:[%s2948_s15 + $0x90] sm:$0xff] }
  0x43   : > { %v329_v29 = vpack.c.bf16 %v307_v25, %v305_v24  ;;  %v309_v30 = vld [vmem:[%s2948_s15 + $0xa8] sm:$0xff]  ;;  %v311_v31 = vld [vmem:[%s2948_s15 + $0xb8] sm:$0xff]  ;;  %v308_v32 = vld [vmem:[%s2948_s15 + $0xa0] sm:$0xff]  ;;  %v328_v33 = vpack.c.bf16 %v306_v28, %v304_v26 }
  0x44   : > { %819 = vmatpush1.bf16.msra.mxu0 %v322_v14  ;;  %2275 = vmatpush1.bf16.msra.mxu1 %v322_v14  ;;  %v310_v34 = vld [vmem:[%s2948_s15 + $0xb0] sm:$0xff]  ;;  %v331_v35 = vpack.c.bf16 %v311_v31, %v309_v30  ;;  %v313_v36 = vld [vmem:[%s2948_s15 + $0xc8] sm:$0xff]  ;;  %v315_v37 = vld [vmem:[%s2948_s15 + $0xd8] sm:$0xff] }
  0x45   : > { %820 = vmatprep.subr.bf16.mxu0 %v325_v15  ;;  %2268 = vmatprep.subr.bf16.mxu1 %v325_v15  ;;  %v384_v38 = vld [vmem:[%s3574_s2] sm:$0xff]  ;;  %v386_v39 = vld [vmem:[%s3574_s2 + $0x10] sm:$0xff]  ;;  %v330_v40 = vpack.c.bf16 %v310_v34, %v308_v32  ;;  %v385_v41 = vld [vmem:[%s3574_s2 + $0x8] sm:$0xff]  ;;  %v333_v42 = vpack.c.bf16 %v315_v37, %v313_v36 }
  0x46   : > { %434 = vperm.xlu0 %2361, %v384_v38   ;;  %v312_v43 = vld [vmem:[%s2948_s15 + $0xc0] sm:$0xff]  ;;  %v314_v44 = vld [vmem:[%s2948_s15 + $0xd0] sm:$0xff]  ;;  %v317_v45 = vld [vmem:[%s2948_s15 + $0xe8] sm:$0xff]  ;;  %444 = vperm.xlu1 %2362, %v386_v39  }
  0x47   : > { %v319_v46 = vld [vmem:[%s2948_s15 + $0xf8] sm:$0xff]  ;;  %v332_v48 = vpack.c.bf16 %v314_v44, %v312_v43  ;;  %v388_v49 = vld [vmem:[%s3574_s2 + $0x20] sm:$0xff]  ;;  %v318_v52 = vld [vmem:[%s2948_s15 + $0xf0] sm:$0xff] }
  0x48   : > { %821 = vmatpush1.bf16.msra.mxu0 %v324_v20  ;;  %2276 = vmatpush1.bf16.msra.mxu1 %v324_v20  ;;  %v387_v47 = vld [vmem:[%s3574_s2 + $0x18] sm:$0xff]  ;;  %v335_v50 = vpack.c.bf16 %v319_v46, %v317_v45  ;;  %v316_v51 = vld [vmem:[%s2948_s15 + $0xe0] sm:$0xff]  ;;  %v389_v53 = vld [vmem:[%s3574_s2 + $0x28] sm:$0xff]  ;;  %s1675_s15 = sshll.u32 %s3403_s17, 4  ;;  %s3429_s15 = int_to_ptr.vmem [resolvable:$true] %s1675_s15 }
  0x49   : > { %822 = vmatprep.subr.bf16.mxu0 %v327_v21  ;;  %2269 = vmatprep.subr.bf16.mxu1 %v327_v21  ;;  %v334_v54 = vpack.c.bf16 %v318_v52, %v316_v51  ;;  %v390_v55 = vld [vmem:[%s3574_s2 + $0x30] sm:$0xff]  ;;  %v2587_v56 = vld [vmem:[%s3573_s1] sm:$0xff]   ;;  %v391_v58 = vld [vmem:[%s3574_s2 + $0x38] sm:$0xff]  ;;  %s2641_s28 = scalar_lea.vmem %s3429_s15, 2048  ;;  %p2648_p6 = scmp.lt.s32.totalorder %s3429_s15, %s2646_s9 }
  0x4a   : > { %439 = vperm.xlu0 %2361, %v385_v41   ;;  %449 = vperm.xlu1 %2362, %v387_v47   ;;  %v2588_v57 = vld [vmem:[%s3573_s1 + $0x60] sm:$0xff]   ;;  %v393_v60 = vld [vmem:[%s3574_s2 + $0x48] sm:$0xff]  ;;  %v394_v62 = vld [vmem:[%s3574_s2 + $0x50] sm:$0xff]  ;;  %p2642_p8 = scmp.ne.s32.totalorder %s3429_s15, %s2641_s28  ;;  %p2649_p13 = scmp.lt.s32.totalorder %s2647_s30, %s2641_s28 }
  0x4b   : > { %v392_v59 = vld [vmem:[%s3574_s2 + $0x40] sm:$0xff]  ;;  %v2589_v61 = vld [vmem:[%s3573_s1 + $0x8] sm:$0xff]   ;;  %v395_v1 = vld [vmem:[%s3574_s2 + $0x58] sm:$0xff] }
  0x4c   : > { %823 = vmatpush1.bf16.msra.mxu0 %v326_v27  ;;  %2277 = vmatpush1.bf16.msra.mxu1 %v326_v27  ;;  %v2590_v63 = vld [vmem:[%s3573_s1 + $0x68] sm:$0xff]   ;;  %v396_v2 = vld [vmem:[%s3574_s2 + $0x60] sm:$0xff]  ;;  %v398_v4 = vld [vmem:[%s3574_s2 + $0x70] sm:$0xff]  ;;  %p2643_p11 = pnand %p2642_p8, %p3586_p9  ;;  %p2650_p2 = por %p2649_p13, %p2648_p6 }
  0x4d   : > { %824 = vmatprep.subr.bf16.mxu0 %v329_v29  ;;  %2270 = vmatprep.subr.bf16.mxu1 %v329_v29  ;;  %v397_v3 = vld [vmem:[%s3574_s2 + $0x68] sm:$0xff]  ;;  %v2591_v5 = vld [vmem:[%s3573_s1 + $0x10] sm:$0xff]   ;;  %v399_v7 = vld [vmem:[%s3574_s2 + $0x78] sm:$0xff] }
  0x4e   : > { %454 = vperm.xlu0 %2361, %v388_v49   ;;  %459 = vperm.xlu1 %2362, %v389_v53   ;;  %v2592_v6 = vld [vmem:[%s3573_s1 + $0x70] sm:$0xff]   ;;  %v400_v8 = vld [vmem:[%s3574_s2 + $0x80] sm:$0xff]  ;;  %v401_v9 = vld [vmem:[%s3574_s2 + $0x88] sm:$0xff]  ;;  %p2644_p0 = pneg %p2643_p11 }
  0x4f   : > { %v402_v10 = vld [vmem:[%s3574_s2 + $0x90] sm:$0xff]  ;;  %v2593_v11 = vld [vmem:[%s3573_s1 + $0x18] sm:$0xff]   ;;  %v404_v14 = vld [vmem:[%s3574_s2 + $0xa0] sm:$0xff] }
  0x50   : > { %825 = vmatpush1.bf16.msra.mxu0 %v328_v33  ;;  %2278 = vmatpush1.bf16.msra.mxu1 %v328_v33  ;;  %v2594_v12 = vld [vmem:[%s3573_s1 + $0x78] sm:$0xff]   ;;  %v405_v15 = vld [vmem:[%s3574_s2 + $0xa8] sm:$0xff]  ;;  %v406_v16 = vld [vmem:[%s3574_s2 + $0xb0] sm:$0xff]  ;;  %p2651_p5 = pnand %p2650_p2, %p2644_p0 }
  0x51   : > { %826 = vmatprep.subr.bf16.mxu0 %v331_v35  ;;  %2271 = vmatprep.subr.bf16.mxu1 %v331_v35  ;;  %v403_v13 = vld [vmem:[%s3574_s2 + $0x98] sm:$0xff]  ;;  %v2595_v17 = vld [vmem:[%s3573_s1 + $0x20] sm:$0xff]   ;;  %v409_v21 = vld [vmem:[%s3574_s2 + $0xc8] sm:$0xff] }
  0x52   : > { %464 = vperm.xlu0 %2361, %v390_v55   ;;  %469 = vperm.xlu1 %2362, %v391_v58   ;;  %v2596_v18 = vld [vmem:[%s3573_s1 + $0x80] sm:$0xff]   ;;  %v407_v19 = vld [vmem:[%s3574_s2 + $0xb8] sm:$0xff]  ;;  %v410_v22 = vld [vmem:[%s3574_s2 + $0xd0] sm:$0xff] }
  0x53   : > { %v408_v20 = vld [vmem:[%s3574_s2 + $0xc0] sm:$0xff]  ;;  %v2597_v23 = vld [vmem:[%s3573_s1 + $0x28] sm:$0xff]   ;;  %v411_v25 = vld [vmem:[%s3574_s2 + $0xd8] sm:$0xff] }
  0x54   : > { %827 = vmatpush1.bf16.msra.mxu0 %v330_v40  ;;  %2279 = vmatpush1.bf16.msra.mxu1 %v330_v40  ;;  %v2598_v24 = vld [vmem:[%s3573_s1 + $0x88] sm:$0xff]   ;;  %v412_v26 = vld [vmem:[%s3574_s2 + $0xe0] sm:$0xff]  ;;  %v414_v28 = vld [vmem:[%s3574_s2 + $0xf0] sm:$0xff] }
  0x55   : > { %828 = vmatprep.subr.bf16.mxu0 %v333_v42  ;;  %2272 = vmatprep.subr.bf16.mxu1 %v333_v42  ;;  %v413_v27 = vld [vmem:[%s3574_s2 + $0xe8] sm:$0xff]  ;;  %v2599_v29 = vld [vmem:[%s3573_s1 + $0x30] sm:$0xff]   ;;  %v415_v31 = vld [vmem:[%s3574_s2 + $0xf8] sm:$0xff] }
  0x56   : > { %474 = vperm.xlu0 %2361, %v392_v59   ;;  %479 = vperm.xlu1 %2362, %v393_v60   ;;  %v2600_v30 = vld [vmem:[%s3573_s1 + $0x90] sm:$0xff]   ;;  %v416_v32 = vld [vmem:[%s3574_s2 + $0x100] sm:$0xff]  ;;  %v417_v33 = vld [vmem:[%s3574_s2 + $0x108] sm:$0xff] }
  0x57   : > { %v418_v34 = vld [vmem:[%s3574_s2 + $0x110] sm:$0xff]  ;;  %v2601_v35 = vld [vmem:[%s3573_s1 + $0x38] sm:$0xff]   ;;  %v420_v38 = vld [vmem:[%s3574_s2 + $0x120] sm:$0xff] }
  0x58   : > { %829 = vmatpush1.bf16.msra.mxu0 %v332_v48  ;;  %2280 = vmatpush1.bf16.msra.mxu1 %v332_v48  ;;  %v2602_v36 = vld [vmem:[%s3573_s1 + $0x98] sm:$0xff]   ;;  %v421_v39 = vld [vmem:[%s3574_s2 + $0x128] sm:$0xff]  ;;  %v422_v40 = vld [vmem:[%s3574_s2 + $0x130] sm:$0xff] }
  0x59   : > { %830 = vmatprep.subr.bf16.mxu0 %v335_v50  ;;  %2273 = vmatprep.subr.bf16.mxu1 %v335_v50  ;;  %v419_v37 = vld [vmem:[%s3574_s2 + $0x118] sm:$0xff]  ;;  %v2603_v41 = vld [vmem:[%s3573_s1 + $0x40] sm:$0xff]   ;;  %v425_v45 = vld [vmem:[%s3574_s2 + $0x148] sm:$0xff] }
  0x5a   : > { %484 = vperm.xlu0 %2361, %v394_v62   ;;  %489 = vperm.xlu1 %2362, %v395_v1   ;;  %v2604_v42 = vld [vmem:[%s3573_s1 + $0xa0] sm:$0xff]   ;;  %v423_v43 = vld [vmem:[%s3574_s2 + $0x138] sm:$0xff]  ;;  %v426_v46 = vld [vmem:[%s3574_s2 + $0x150] sm:$0xff] }
  0x5b   : > { %v424_v44 = vld [vmem:[%s3574_s2 + $0x140] sm:$0xff]  ;;  %v2605_v47 = vld [vmem:[%s3573_s1 + $0x48] sm:$0xff]   ;;  %v427_v49 = vld [vmem:[%s3574_s2 + $0x158] sm:$0xff] }
  0x5c   : > { %831 = vmatpush1.bf16.msra.mxu0 %v334_v54  ;;  %2281 = vmatpush1.bf16.msra.mxu1 %v334_v54  ;;  %v2606_v48 = vld [vmem:[%s3573_s1 + $0xa8] sm:$0xff]   ;;  %v428_v50 = vld [vmem:[%s3574_s2 + $0x160] sm:$0xff]  ;;  %v430_v52 = vld [vmem:[%s3574_s2 + $0x170] sm:$0xff] }
  0x5d   : > { %v429_v51 = vld [vmem:[%s3574_s2 + $0x168] sm:$0xff]  ;;  %v2607_v53 = vld [vmem:[%s3573_s1 + $0x50] sm:$0xff]   ;;  %v431_v55 = vld [vmem:[%s3574_s2 + $0x178] sm:$0xff] }
  0x5e   : > { %494 = vperm.xlu0 %2361, %v396_v2   ;;  %499 = vperm.xlu1 %2362, %v397_v3   ;;  %v2608_v54 = vld [vmem:[%s3573_s1 + $0xb0] sm:$0xff]  }
  0x5f   : > { %849 = vmatmul.mubr.bf16.vlgmr.msra.gmra.mrb[0].mxu0 %v2587_v56  ;;  %969 = vmatmul.mubr.bf16.vlgmr.msra.gmra.mrb[0].mxu1 %v2588_v57  ;;  %v2609_v56 = vld [vmem:[%s3573_s1 + $0x58] sm:$0xff]  }
  0x60   : > { %858 = vmatprep.mubr.bf16.mxu0 %v2788_v0  ;;  %978 = vmatprep.mubr.bf16.mxu1 %v2788_v0  ;;  %v2610_v57 = vld [vmem:[%s3573_s1 + $0xb8] sm:$0xff]  }
  0x62   : > { %504 = vperm.xlu0 %2361, %v398_v4   ;;  %509 = vperm.xlu1 %2362, %v399_v7  }
  0x66   : > { %514 = vperm.xlu0 %2361, %v400_v8   ;;  %519 = vperm.xlu1 %2362, %v401_v9  }
  0x67   : > { %859 = vmatmul.mubr.bf16.gmra.mrb[4].mxu0 %v2589_v61  ;;  %979 = vmatmul.mubr.bf16.gmra.mrb[4].mxu1 %v2590_v63 }
  0x68   : > { %868 = vmatprep.mubr.bf16.mxu0 %v2788_v0  ;;  %988 = vmatprep.mubr.bf16.mxu1 %v2788_v0 }
  0x6a   : > { %524 = vperm.xlu0 %2361, %v402_v10   ;;  %529 = vperm.xlu1 %2362, %v403_v13  }
  0x6e   : > { %534 = vperm.xlu0 %2361, %v404_v14   ;;  %539 = vperm.xlu1 %2362, %v405_v15  }
  0x6f   : > { %869 = vmatmul.mubr.bf16.gmra.mrb[8].mxu0 %v2591_v5  ;;  %989 = vmatmul.mubr.bf16.gmra.mrb[8].mxu1 %v2592_v6 }
  0x70   : > { %878 = vmatprep.mubr.bf16.mxu0 %v2788_v0  ;;  %998 = vmatprep.mubr.bf16.mxu1 %v2788_v0 }
  0x72   : > { %544 = vperm.xlu0 %2361, %v406_v16   ;;  %549 = vperm.xlu1 %2362, %v407_v19  }
  0x76   : > { %554 = vperm.xlu0 %2361, %v408_v20   ;;  %559 = vperm.xlu1 %2362, %v409_v21  }
  0x77   : > { %879 = vmatmul.mubr.bf16.gmra.mrb[12].mxu0 %v2593_v11  ;;  %999 = vmatmul.mubr.bf16.gmra.mrb[12].mxu1 %v2594_v12 }
  0x78   : > { %888 = vmatprep.mubr.bf16.mxu0 %v2788_v0  ;;  %1008 = vmatprep.mubr.bf16.mxu1 %v2788_v0 }
  0x7a   : > { %564 = vperm.xlu0 %2361, %v410_v22   ;;  %569 = vperm.xlu1 %2362, %v411_v25  }
  0x7e   : > { %574 = vperm.xlu0 %2361, %v412_v26   ;;  %579 = vperm.xlu1 %2362, %v413_v27  }
  0x7f   : > { %889 = vmatmul.mubr.bf16.gmra.mrb[16].mxu0 %v2595_v17  ;;  %1009 = vmatmul.mubr.bf16.gmra.mrb[16].mxu1 %v2596_v18 }
  0x80   : > { %898 = vmatprep.mubr.bf16.mxu0 %v2788_v0  ;;  %1018 = vmatprep.mubr.bf16.mxu1 %v2788_v0 }
  0x82   : > { %584 = vperm.xlu0 %2361, %v414_v28   ;;  %589 = vperm.xlu1 %2362, %v415_v31  }
  0x86   : > { %594 = vperm.xlu0 %2361, %v416_v32   ;;  %599 = vperm.xlu1 %2362, %v417_v33  }
  0x87   : > { %899 = vmatmul.mubr.bf16.gmra.mrb[20].mxu0 %v2597_v23  ;;  %1019 = vmatmul.mubr.bf16.gmra.mrb[20].mxu1 %v2598_v24 }
  0x88   : > { %908 = vmatprep.mubr.bf16.mxu0 %v2788_v0  ;;  %1028 = vmatprep.mubr.bf16.mxu1 %v2788_v0 }
  0x8a   : > { %604 = vperm.xlu0 %2361, %v418_v34   ;;  %609 = vperm.xlu1 %2362, %v419_v37  }
  0x8e   : > { %614 = vperm.xlu0 %2361, %v420_v38   ;;  %619 = vperm.xlu1 %2362, %v421_v39  }
  0x8f   : > { %909 = vmatmul.mubr.bf16.gmra.mrb[24].mxu0 %v2599_v29  ;;  %1029 = vmatmul.mubr.bf16.gmra.mrb[24].mxu1 %v2600_v30 }
  0x90   : > { %918 = vmatprep.mubr.bf16.mxu0 %v2788_v0  ;;  %1038 = vmatprep.mubr.bf16.mxu1 %v2788_v0 }
  0x92   : > { %624 = vperm.xlu0 %2361, %v422_v40   ;;  %629 = vperm.xlu1 %2362, %v423_v43  }
  0x96   : > { %634 = vperm.xlu0 %2361, %v424_v44   ;;  %639 = vperm.xlu1 %2362, %v425_v45  }
  0x97   : > { %919 = vmatmul.mubr.bf16.gmra.mrb[28].mxu0 %v2601_v35  ;;  %1039 = vmatmul.mubr.bf16.gmra.mrb[28].mxu1 %v2602_v36 }
  0x98   : > { %928 = vmatprep.mubr.bf16.mxu0 %v2788_v0  ;;  %1048 = vmatprep.mubr.bf16.mxu1 %v2788_v0 }
  0x9a   : > { %644 = vperm.xlu0 %2361, %v426_v46   ;;  %649 = vperm.xlu1 %2362, %v427_v49  }
  0x9e   : > { %654 = vperm.xlu0 %2361, %v428_v50   ;;  %659 = vperm.xlu1 %2362, %v429_v51  }
  0x9f   : > { %929 = vmatmul.mubr.bf16.gmra.mrb[32].mxu0 %v2603_v41  ;;  %1049 = vmatmul.mubr.bf16.gmra.mrb[32].mxu1 %v2604_v42 }
  0xa0   : > { %938 = vmatprep.mubr.bf16.mxu0 %v2788_v0  ;;  %1058 = vmatprep.mubr.bf16.mxu1 %v2788_v0 }
  0xa2   : > { %664 = vperm.xlu0 %2361, %v430_v52   ;;  %669 = vperm.xlu1 %2362, %v431_v55  }
  0xa7   : > { %939 = vmatmul.mubr.bf16.gmra.mrb[36].mxu0 %v2605_v47  ;;  %1059 = vmatmul.mubr.bf16.gmra.mrb[36].mxu1 %v2606_v48 }
  0xa8   : > { %948 = vmatprep.mubr.bf16.mxu0 %v2788_v0  ;;  %1068 = vmatprep.mubr.bf16.mxu1 %v2788_v0 }
  0xaf   : > { %949 = vmatmul.mubr.bf16.gmra.mrb[40].mxu0 %v2607_v53  ;;  %1069 = vmatmul.mubr.bf16.gmra.mrb[40].mxu1 %v2608_v54 }
  0xb0   : > { %958 = vmatprep.mubr.bf16.mxu0 %v2788_v0  ;;  %1078 = vmatprep.mubr.bf16.mxu1 %v2788_v0 }
  0xb7   : > { %959 = vmatmul.mubr.bf16.gmra.mrb[44].mxu0 %v2609_v56  ;;  %1079 = vmatmul.mubr.bf16.gmra.mrb[44].mxu1 %v2610_v57 }
  0xc5   : > { %v435_v58 = vpop.permute.xlu0 %434  ;;  %v445_v59 = vpop.permute.xlu1 %444 }
  0xc9   : > { %v440_v60 = vpop.permute.xlu0 %439  ;;  %v450_v61 = vpop.permute.xlu1 %449 }
  0xcd   : > { %v3228_v62 = vpop.permute.xlu0 %454  ;;  %v3230_v63 = vpop.permute.xlu1 %459 }
  0xd1   : > { %v3232_v1 = vpop.permute.xlu0 %464  ;;  %v3234_v0 = vpop.permute.xlu1 %469 }
  0xd5   : > { %v3236_v2 = vpop.permute.xlu0 %474  ;;  %v3238_v3 = vpop.permute.xlu1 %479 }
  0xd9   : > { %v3240_v4 = vpop.permute.xlu0 %484  ;;  %v3242_v5 = vpop.permute.xlu1 %489 }
  0xdd   : > { %v3244_v6 = vpop.permute.xlu0 %494  ;;  %v3246_v7 = vpop.permute.xlu1 %499 }
  0xe1   : > { %v3248_v8 = vpop.permute.xlu0 %504  ;;  %v3250_v9 = vpop.permute.xlu1 %509 }
  0xe5   : > { %v3252_v10 = vpop.permute.xlu0 %514  ;;  %v3254_v11 = vpop.permute.xlu1 %519 }
  0xe9   : > { %v3256_v12 = vpop.permute.xlu0 %524  ;;  %v3258_v13 = vpop.permute.xlu1 %529 }
  0xed   : > { %v3260_v14 = vpop.permute.xlu0 %534  ;;  %v3262_v15 = vpop.permute.xlu1 %539 }
  0xf1   : > { %v3264_v16 = vpop.permute.xlu0 %544  ;;  %v3266_v17 = vpop.permute.xlu1 %549 }
  0xf5   : > { %v555_v18 = vpop.permute.xlu0 %554  ;;  %v560_v19 = vpop.permute.xlu1 %559 }
  0xf9   : > { %v565_v40 = vpop.permute.xlu0 %564  ;;  %v570_v41 = vpop.permute.xlu1 %569 }
 0x132   : > { %v850_v20 = vpop.f32.mrb[0].mxu0  ;;  %v970_v21 = vpop.f32.mrb[0].mxu1 }
 0x133   : > { %v851_v22 = vadd.f32 %v850_v20, %v435_v58  ;;  %v852_v23 = vpop.f32.mrb[1].mxu0  ;;  %v3268_v24 = vadd.f32 %v970_v21, %v555_v18  ;;  %v972_v25 = vpop.f32.mrb[1].mxu1 }
 0x134   : > { %v853_v26 = vadd.f32 %v852_v23, %v435_v58  ;;  %v854_v27 = vpop.f32.mrb[2].mxu0  ;;  %v3270_v28 = vadd.f32 %v972_v25, %v555_v18  ;;  %v974_v29 = vpop.f32.mrb[2].mxu1 }
 0x135   : > { %v855_v30 = vadd.f32 %v854_v27, %v440_v60  ;;  %v856_v31 = vpop.f32.mrb[3].mxu0  ;;  %v3272_v32 = vadd.f32 %v974_v29, %v560_v19  ;;  %v976_v33 = vpop.f32.mrb[3].mxu1 }
 0x136   : > { %v2363_v34 = vpack.i.bf16 %v853_v26, %v851_v22  ;;  %v857_v35 = vadd.f32 %v856_v31, %v440_v60  ;;  %v2491_v36 = vpack.i.bf16 %v3270_v28, %v3268_v24  ;;  %v3276_v37 = vadd.f32 %v976_v33, %v560_v19  ;;  %v575_v19 = vpop.permute.xlu0 %574  ;;  %v580_v20 = vpop.permute.xlu1 %579 }
 0x138   : > { %v2365_v38 = vpack.i.bf16 %v857_v35, %v855_v30  ;;  %2364 = vxpose.xlu0.b32.start [1/16] %v2363_v34, 128  ;;  %v2493_v39 = vpack.i.bf16 %v3276_v37, %v3272_v32 }
 0x13a   : > { %v860_v42 = vpop.f32.mrb[4].mxu0  ;;  %v980_v43 = vpop.f32.mrb[4].mxu1 }
 0x13b   : > { %v861_v44 = vadd.f32 %v860_v42, %v445_v59  ;;  %v862_v45 = vpop.f32.mrb[5].mxu0  ;;  %v3280_v46 = vadd.f32 %v980_v43, %v565_v40  ;;  %v982_v47 = vpop.f32.mrb[5].mxu1 }
 0x13c   : > { %v863_v48 = vadd.f32 %v862_v45, %v445_v59  ;;  %v864_v49 = vpop.f32.mrb[6].mxu0  ;;  %2366 = vxpose.xlu0.b32.cont [2/16] %v2365_v38, 128  ;;  %v3282_v50 = vadd.f32 %v982_v47, %v565_v40  ;;  %v984_v51 = vpop.f32.mrb[6].mxu1 }
 0x13d   : > { %v865_v52 = vadd.f32 %v864_v49, %v450_v61  ;;  %v866_v53 = vpop.f32.mrb[7].mxu0  ;;  %v3284_v54 = vadd.f32 %v984_v51, %v570_v41  ;;  %v986_v55 = vpop.f32.mrb[7].mxu1 }
 0x13e   : > { %v2367_v56 = vpack.i.bf16 %v863_v48, %v861_v44  ;;  %v867_v57 = vadd.f32 %v866_v53, %v450_v61  ;;  %v2495_v58 = vpack.i.bf16 %v3282_v50, %v3280_v46  ;;  %v3288_v60 = vadd.f32 %v986_v55, %v570_v41  ;;  %v585_v45 = vpop.permute.xlu0 %584  ;;  %v590_v47 = vpop.permute.xlu1 %589 }
 0x140   : > { %v2369_v18 = vpack.i.bf16 %v867_v57, %v865_v52  ;;  %2368 = vxpose.xlu0.b32.cont [3/16] %v2367_v56, 128  ;;  %v2497_v59 = vpack.i.bf16 %v3288_v60, %v3284_v54 }
 0x142   : > { %v870_v21 = vpop.f32.mrb[8].mxu0  ;;  %v990_v22 = vpop.f32.mrb[8].mxu1 }
 0x143   : > { %v871_v23 = vadd.f32 %v870_v21, %v3228_v62  ;;  %v872_v25 = vpop.f32.mrb[9].mxu0  ;;  %v3293_v26 = vadd.f32 %v990_v22, %v575_v19  ;;  %v992_v61 = vpop.f32.mrb[9].mxu1 }
 0x144   : > { %v873_v27 = vadd.f32 %v872_v25, %v3228_v62  ;;  %v874_v29 = vpop.f32.mrb[10].mxu0  ;;  %2370 = vxpose.xlu0.b32.cont [4/16] %v2369_v18, 128  ;;  %v3296_v30 = vadd.f32 %v992_v61, %v575_v19  ;;  %v994_v31 = vpop.f32.mrb[10].mxu1 }
 0x145   : > { %v875_v33 = vadd.f32 %v874_v29, %v3230_v63  ;;  %v876_v34 = vpop.f32.mrb[11].mxu0  ;;  %v3299_v35 = vadd.f32 %v994_v31, %v580_v20  ;;  %v996_v38 = vpop.f32.mrb[11].mxu1 }
 0x146   : > { %v2371_v40 = vpack.i.bf16 %v873_v27, %v871_v23  ;;  %v877_v41 = vadd.f32 %v876_v34, %v3230_v63  ;;  %v2499_v42 = vpack.i.bf16 %v3296_v30, %v3293_v26  ;;  %v3304_v43 = vadd.f32 %v996_v38, %v580_v20  ;;  %v595_v31 = vpop.permute.xlu0 %594 }
 0x148   : > { %v2373_v62 = vpack.i.bf16 %v877_v41, %v875_v33  ;;  %2372 = vxpose.xlu0.b32.cont [5/16] %v2371_v40, 128  ;;  %v2501_v44 = vpack.i.bf16 %v3304_v43, %v3299_v35  ;;  %v600_v33 = vpop.permute.xlu1 %599 }
 0x14a   : > { %v880_v48 = vpop.f32.mrb[12].mxu0  ;;  %v1000_v49 = vpop.f32.mrb[12].mxu1 }
 0x14b   : > { %v881_v51 = vadd.f32 %v880_v48, %v3232_v1  ;;  %v882_v52 = vpop.f32.mrb[13].mxu0  ;;  %v3309_v53 = vadd.f32 %v1000_v49, %v585_v45  ;;  %v1002_v63 = vpop.f32.mrb[13].mxu1 }
 0x14c   : > { %v883_v55 = vadd.f32 %v882_v52, %v3232_v1  ;;  %v884_v56 = vpop.f32.mrb[14].mxu0  ;;  %2374 = vxpose.xlu0.b32.cont [6/16] %v2373_v62, 128  ;;  %v3312_v57 = vadd.f32 %v1002_v63, %v585_v45  ;;  %v1004_v18 = vpop.f32.mrb[14].mxu1 }
 0x14d   : > { %v885_v19 = vadd.f32 %v884_v56, %v3234_v0  ;;  %v886_v20 = vpop.f32.mrb[15].mxu0  ;;  %v3315_v21 = vadd.f32 %v1004_v18, %v590_v47  ;;  %v1006_v22 = vpop.f32.mrb[15].mxu1 }
 0x14e   : > { %v2375_v23 = vpack.i.bf16 %v883_v55, %v881_v51  ;;  %v887_v25 = vadd.f32 %v886_v20, %v3234_v0  ;;  %v2503_v61 = vpack.i.bf16 %v3312_v57, %v3309_v53  ;;  %v3320_v27 = vadd.f32 %v1006_v22, %v590_v47 }
 0x150   : > { %v2377_v1 = vpack.i.bf16 %v887_v25, %v885_v19  ;;  %2376 = vxpose.xlu0.b32.cont [7/16] %v2375_v23, 128  ;;  %v2505_v29 = vpack.i.bf16 %v3320_v27, %v3315_v21  ;;  %v605_v23 = vpop.permute.xlu0 %604  ;;  %v610_v25 = vpop.permute.xlu1 %609 }
 0x152   : > { %v890_v34 = vpop.f32.mrb[16].mxu0  ;;  %v1010_v38 = vpop.f32.mrb[16].mxu1 }
 0x153   : > { %v891_v40 = vadd.f32 %v890_v34, %v3236_v2  ;;  %v1011_v41 = vadd.f32 %v1010_v38, %v595_v31  ;;  %v892_v0 = vpop.f32.mrb[17].mxu0  ;;  %v1012_v62 = vpop.f32.mrb[17].mxu1 }
 0x154   : > { %v893_v45 = vadd.f32 %v892_v0, %v3236_v2  ;;  %v1013_v47 = vadd.f32 %v1012_v62, %v595_v31  ;;  %v894_v48 = vpop.f32.mrb[18].mxu0  ;;  %2378 = vxpose.xlu0.b32.cont [8/16] %v2377_v1, 128  ;;  %v1014_v49 = vpop.f32.mrb[18].mxu1 }
 0x155   : > { %v895_v51 = vadd.f32 %v894_v48, %v3238_v3  ;;  %v896_v52 = vpop.f32.mrb[19].mxu0  ;;  %v1015_v63 = vadd.f32 %v1014_v49, %v600_v33  ;;  %v1016_v55 = vpop.f32.mrb[19].mxu1 }
 0x156   : > { %v2379_v56 = vpack.i.bf16 %v893_v45, %v891_v40  ;;  %v2057_v18 = vpack.c.bf16 %v1013_v47, %v1011_v41  ;;  %v897_v19 = vadd.f32 %v896_v52, %v3238_v3  ;;  %v1017_v20 = vadd.f32 %v1016_v55, %v600_v33 }
 0x158   : > { %1633 = vst [vmem:[%s3332_s16] sm:$0xff] %v2057_v18  ;;  %v2381_v2 = vpack.i.bf16 %v897_v19, %v895_v51  ;;  %v2058_v22 = vpack.c.bf16 %v1017_v20, %v1015_v63  ;;  %2380 = vxpose.xlu0.b32.cont [9/16] %v2379_v56, 128  ;;  %v620_v19 = vpop.permute.xlu1 %619 }
 0x15a   : > { %1634 = vst [vmem:[%s3332_s16 + $0x8] sm:$0xff] %v2058_v22  ;;  %v900_v1 = vpop.f32.mrb[20].mxu0  ;;  %v1020_v31 = vpop.f32.mrb[20].mxu1 }
 0x15b   : > { %v901_v34 = vadd.f32 %v900_v1, %v3240_v4  ;;  %v1021_v38 = vadd.f32 %v1020_v31, %v605_v23  ;;  %v902_v40 = vpop.f32.mrb[21].mxu0  ;;  %v1022_v3 = vpop.f32.mrb[21].mxu1 }
 0x15c   : > { %v903_v33 = vadd.f32 %v902_v40, %v3240_v4  ;;  %v1023_v41 = vadd.f32 %v1022_v3, %v605_v23  ;;  %v904_v0 = vpop.f32.mrb[22].mxu0  ;;  %v1024_v62 = vpop.f32.mrb[22].mxu1  ;;  %2382 = vxpose.xlu0.b32.cont [10/16] %v2381_v2, 128 }
 0x15d   : > { %v905_v45 = vadd.f32 %v904_v0, %v3242_v5  ;;  %v1025_v47 = vadd.f32 %v1024_v62, %v610_v25  ;;  %v906_v48 = vpop.f32.mrb[23].mxu0  ;;  %v1026_v49 = vpop.f32.mrb[23].mxu1 }
 0x15e   : > { %v2383_v51 = vpack.i.bf16 %v903_v33, %v901_v34  ;;  %v2059_v52 = vpack.c.bf16 %v1023_v41, %v1021_v38  ;;  %v907_v63 = vadd.f32 %v906_v48, %v3242_v5  ;;  %v1027_v55 = vadd.f32 %v1026_v49, %v610_v25  ;;  %v615_v4 = vpop.permute.xlu0 %614 }
 0x160   : > { %1635 = vst [vmem:[%s3332_s16 + $0x10] sm:$0xff] %v2059_v52  ;;  %v2385_v56 = vpack.i.bf16 %v907_v63, %v905_v45  ;;  %v2060_v18 = vpack.c.bf16 %v1027_v55, %v1025_v47  ;;  %2384 = vxpose.xlu0.b32.cont [11/16] %v2383_v51, 128  ;;  %v630_v51 = vpop.permute.xlu1 %629 }
 0x162   : > { %1636 = vst [vmem:[%s3332_s16 + $0x18] sm:$0xff] %v2060_v18  ;;  %v910_v20 = vpop.f32.mrb[24].mxu0  ;;  %v1030_v22 = vpop.f32.mrb[24].mxu1 }
 0x163   : > { %v911_v2 = vadd.f32 %v910_v20, %v3244_v6  ;;  %v1031_v23 = vadd.f32 %v1030_v22, %v615_v4  ;;  %v912_v1 = vpop.f32.mrb[25].mxu0  ;;  %v1032_v31 = vpop.f32.mrb[25].mxu1 }
 0x164   : > { %v913_v34 = vadd.f32 %v912_v1, %v3244_v6  ;;  %v1033_v38 = vadd.f32 %v1032_v31, %v615_v4  ;;  %v914_v5 = vpop.f32.mrb[26].mxu0  ;;  %v1034_v25 = vpop.f32.mrb[26].mxu1  ;;  %2386 = vxpose.xlu0.b32.cont [12/16] %v2385_v56, 128 }
 0x165   : > { %v915_v40 = vadd.f32 %v914_v5, %v3246_v7  ;;  %v1035_v3 = vadd.f32 %v1034_v25, %v620_v19  ;;  %v916_v33 = vpop.f32.mrb[27].mxu0  ;;  %v1036_v41 = vpop.f32.mrb[27].mxu1 }
 0x166   : > { %v2387_v0 = vpack.i.bf16 %v913_v34, %v911_v2  ;;  %v2061_v62 = vpack.c.bf16 %v1033_v38, %v1031_v23  ;;  %v917_v45 = vadd.f32 %v916_v33, %v3246_v7  ;;  %v1037_v47 = vadd.f32 %v1036_v41, %v620_v19  ;;  %v625_v6 = vpop.permute.xlu0 %624  ;;  %v640_v33 = vpop.permute.xlu1 %639 }
 0x168   : > { %1637 = vst [vmem:[%s3332_s16 + $0x20] sm:$0xff] %v2061_v62  ;;  %v2389_v48 = vpack.i.bf16 %v917_v45, %v915_v40  ;;  %v2062_v49 = vpack.c.bf16 %v1037_v47, %v1035_v3  ;;  %2388 = vxpose.xlu0.b32.cont [13/16] %v2387_v0, 128 }
 0x16a   : > { %1638 = vst [vmem:[%s3332_s16 + $0x28] sm:$0xff] %v2062_v49  ;;  %v920_v52 = vpop.f32.mrb[28].mxu0  ;;  %v1040_v63 = vpop.f32.mrb[28].mxu1 }
 0x16b   : > { %v921_v55 = vadd.f32 %v920_v52, %v3248_v8  ;;  %v1041_v56 = vadd.f32 %v1040_v63, %v625_v6  ;;  %v922_v18 = vpop.f32.mrb[29].mxu0  ;;  %v1042_v4 = vpop.f32.mrb[29].mxu1 }
 0x16c   : > { %v923_v20 = vadd.f32 %v922_v18, %v3248_v8  ;;  %v1043_v22 = vadd.f32 %v1042_v4, %v625_v6  ;;  %v924_v7 = vpop.f32.mrb[30].mxu0  ;;  %v1044_v19 = vpop.f32.mrb[30].mxu1  ;;  %2390 = vxpose.xlu0.b32.cont [14/16] %v2389_v48, 128 }
 0x16d   : > { %v925_v2 = vadd.f32 %v924_v7, %v3250_v9  ;;  %v1045_v23 = vadd.f32 %v1044_v19, %v630_v51  ;;  %v926_v1 = vpop.f32.mrb[31].mxu0  ;;  %v1046_v31 = vpop.f32.mrb[31].mxu1 }
 0x16e   : > { %v2391_v34 = vpack.i.bf16 %v923_v20, %v921_v55  ;;  %v2063_v38 = vpack.c.bf16 %v1043_v22, %v1041_v56  ;;  %v927_v5 = vadd.f32 %v926_v1, %v3250_v9  ;;  %v1047_v25 = vadd.f32 %v1046_v31, %v630_v51  ;;  %v635_v8 = vpop.permute.xlu0 %634 }
 0x170   : > { %1639 = vst [vmem:[%s3332_s16 + $0x30] sm:$0xff] %v2063_v38  ;;  %v2393_v40 = vpack.i.bf16 %v927_v5, %v925_v2  ;;  %v2064_v3 = vpack.c.bf16 %v1047_v25, %v1045_v23  ;;  %2392 = vxpose.xlu0.b32.cont [15/16] %v2391_v34, 128  ;;  %v650_v2 = vpop.permute.xlu1 %649 }
 0x172   : > { %1640 = vst [vmem:[%s3332_s16 + $0x38] sm:$0xff] %v2064_v3  ;;  %v930_v41 = vpop.f32.mrb[32].mxu0  ;;  %v1050_v0 = vpop.f32.mrb[32].mxu1 }
 0x173   : > { %v931_v62 = vadd.f32 %v930_v41, %v3252_v10  ;;  %v1051_v45 = vadd.f32 %v1050_v0, %v635_v8  ;;  %v932_v47 = vpop.f32.mrb[33].mxu0  ;;  %v1052_v48 = vpop.f32.mrb[33].mxu1 }
 0x174   : > { %v933_v49 = vadd.f32 %v932_v47, %v3252_v10  ;;  %v1053_v6 = vadd.f32 %v1052_v48, %v635_v8  ;;  %v934_v9 = vpop.f32.mrb[34].mxu0  ;;  %v1054_v51 = vpop.f32.mrb[34].mxu1  ;;  %2394 = vxpose.xlu0.b32.end [16/16] %v2393_v40, 128 }
 0x175   : > { %v935_v52 = vadd.f32 %v934_v9, %v3254_v11  ;;  %v1055_v63 = vadd.f32 %v1054_v51, %v640_v33  ;;  %v936_v55 = vpop.f32.mrb[35].mxu0  ;;  %v1056_v56 = vpop.f32.mrb[35].mxu1 }
 0x176   : > { %v2475_v18 = vpack.i.bf16 %v933_v49, %v931_v62  ;;  %v2065_v4 = vpack.c.bf16 %v1053_v6, %v1051_v45  ;;  %v937_v20 = vadd.f32 %v936_v55, %v3254_v11  ;;  %v1057_v22 = vadd.f32 %v1056_v56, %v640_v33  ;;  %v645_v10 = vpop.permute.xlu0 %644  ;;  %v660_v9 = vpop.permute.xlu1 %659 }
 0x178   : > { %1641 = vst [vmem:[%s3332_s16 + $0x40] sm:$0xff] %v2065_v4  ;;  %v2477_v7 = vpack.i.bf16 %v937_v20, %v935_v52  ;;  %v2066_v19 = vpack.c.bf16 %v1057_v22, %v1055_v63  ;;  %2476 = vxpose.xlu1.b32.start [1/16] %v2475_v18, 128 }
 0x17a   : > { %1642 = vst [vmem:[%s3332_s16 + $0x48] sm:$0xff] %v2066_v19  ;;  %v940_v23 = vpop.f32.mrb[36].mxu0  ;;  %v1060_v1 = vpop.f32.mrb[36].mxu1 }
 0x17b   : > { %v941_v31 = vadd.f32 %v940_v23, %v3256_v12  ;;  %v1061_v34 = vadd.f32 %v1060_v1, %v645_v10  ;;  %v942_v38 = vpop.f32.mrb[37].mxu0  ;;  %v1062_v5 = vpop.f32.mrb[37].mxu1 }
 0x17c   : > { %v943_v25 = vadd.f32 %v942_v38, %v3256_v12  ;;  %v1063_v40 = vadd.f32 %v1062_v5, %v645_v10  ;;  %v944_v11 = vpop.f32.mrb[38].mxu0  ;;  %v1064_v3 = vpop.f32.mrb[38].mxu1  ;;  %2478 = vxpose.xlu1.b32.cont [2/16] %v2477_v7, 128 }
 0x17d   : > { %v945_v8 = vadd.f32 %v944_v11, %v3258_v13  ;;  %v1065_v33 = vadd.f32 %v1064_v3, %v650_v2  ;;  %v946_v41 = vpop.f32.mrb[39].mxu0  ;;  %v1066_v0 = vpop.f32.mrb[39].mxu1 }
 0x17e   : > { %v2479_v62 = vpack.i.bf16 %v943_v25, %v941_v31  ;;  %v2067_v45 = vpack.c.bf16 %v1063_v40, %v1061_v34  ;;  %v947_v47 = vadd.f32 %v946_v41, %v3258_v13  ;;  %v1067_v48 = vadd.f32 %v1066_v0, %v650_v2  ;;  %v655_v12 = vpop.permute.xlu0 %654  ;;  %v670_v25 = vpop.permute.xlu1 %669 }
 0x180   : > { %1643 = vst [vmem:[%s3332_s16 + $0x50] sm:$0xff] %v2067_v45  ;;  %v2481_v49 = vpack.i.bf16 %v947_v47, %v945_v8  ;;  %v2068_v6 = vpack.c.bf16 %v1067_v48, %v1065_v33  ;;  %2480 = vxpose.xlu1.b32.cont [3/16] %v2479_v62, 128 }
 0x182   : > { %1644 = vst [vmem:[%s3332_s16 + $0x58] sm:$0xff] %v2068_v6  ;;  %v950_v51 = vpop.f32.mrb[40].mxu0  ;;  %v1070_v52 = vpop.f32.mrb[40].mxu1 }
 0x183   : > { %v951_v63 = vadd.f32 %v950_v51, %v3260_v14  ;;  %v1071_v55 = vadd.f32 %v1070_v52, %v655_v12  ;;  %v952_v56 = vpop.f32.mrb[41].mxu0  ;;  %v1072_v18 = vpop.f32.mrb[41].mxu1 }
 0x184   : > { %v953_v4 = vadd.f32 %v952_v56, %v3260_v14  ;;  %v1073_v20 = vadd.f32 %v1072_v18, %v655_v12  ;;  %v954_v13 = vpop.f32.mrb[42].mxu0  ;;  %v1074_v22 = vpop.f32.mrb[42].mxu1  ;;  %2482 = vxpose.xlu1.b32.cont [4/16] %v2481_v49, 128 }
 0x185   : > { %v955_v7 = vadd.f32 %v954_v13, %v3262_v15  ;;  %v1075_v19 = vadd.f32 %v1074_v22, %v660_v9  ;;  %v956_v10 = vpop.f32.mrb[43].mxu0  ;;  %v1076_v2 = vpop.f32.mrb[43].mxu1 }
 0x186   : > { %v2483_v23 = vpack.i.bf16 %v953_v4, %v951_v63  ;;  %v2069_v1 = vpack.c.bf16 %v1073_v20, %v1071_v55  ;;  %v957_v31 = vadd.f32 %v956_v10, %v3262_v15  ;;  %v1077_v34 = vadd.f32 %v1076_v2, %v660_v9  ;;  %v665_v14 = vpop.permute.xlu0 %664 }
 0x188   : > { %1645 = vst [vmem:[%s3332_s16 + $0x60] sm:$0xff] %v2069_v1  ;;  %v2485_v38 = vpack.i.bf16 %v957_v31, %v955_v7  ;;  %v2070_v5 = vpack.c.bf16 %v1077_v34, %v1075_v19  ;;  %2484 = vxpose.xlu1.b32.cont [5/16] %v2483_v23, 128 }
 0x18a   : > { %1646 = vst [vmem:[%s3332_s16 + $0x68] sm:$0xff] %v2070_v5  ;;  %v960_v40 = vpop.f32.mrb[44].mxu0  ;;  %v1080_v11 = vpop.f32.mrb[44].mxu1 }
 0x18b   : > { %v961_v3 = vadd.f32 %v960_v40, %v3264_v16  ;;  %v1081_v8 = vadd.f32 %v1080_v11, %v665_v14  ;;  %v962_v33 = vpop.f32.mrb[45].mxu0  ;;  %v1082_v41 = vpop.f32.mrb[45].mxu1 }
 0x18c   : > { %v963_v0 = vadd.f32 %v962_v33, %v3264_v16  ;;  %v1083_v62 = vadd.f32 %v1082_v41, %v665_v14  ;;  %v964_v15 = vpop.f32.mrb[46].mxu0  ;;  %v1084_v45 = vpop.f32.mrb[46].mxu1  ;;  %2486 = vxpose.xlu1.b32.cont [6/16] %v2485_v38, 128 }
 0x18d   : > { %v965_v47 = vadd.f32 %v964_v15, %v3266_v17  ;;  %v1085_v48 = vadd.f32 %v1084_v45, %v670_v25  ;;  %v966_v49 = vpop.f32.mrb[47].mxu0  ;;  %v1086_v6 = vpop.f32.mrb[47].mxu1 }
 0x18e   : > { %v2487_v12 = vpack.i.bf16 %v963_v0, %v961_v3  ;;  %v2071_v9 = vpack.c.bf16 %v1083_v62, %v1081_v8  ;;  %v967_v51 = vadd.f32 %v966_v49, %v3266_v17  ;;  %v1087_v52 = vadd.f32 %v1086_v6, %v670_v25 }
 0x190   : > { %1647 = vst [vmem:[%s3332_s16 + $0x70] sm:$0xff] %v2071_v9  ;;  %v2489_v63 = vpack.i.bf16 %v967_v51, %v965_v47  ;;  %v2072_v55 = vpack.c.bf16 %v1087_v52, %v1085_v48  ;;  %2488 = vxpose.xlu1.b32.cont [7/16] %v2487_v12, 128 }
 0x192   : > { %1648 = vst [vmem:[%s3332_s16 + $0x78] sm:$0xff] %v2072_v55 }
 0x194   : > { %2490 = vxpose.xlu1.b32.cont [8/16] %v2489_v63, 128 }
 0x198   : > { %2492 = vxpose.xlu1.b32.cont [9/16] %v2491_v36, 128 }
 0x19c   : > { %2494 = vxpose.xlu1.b32.cont [10/16] %v2493_v39, 128 }
 0x1a0   : > { %2496 = vxpose.xlu1.b32.cont [11/16] %v2495_v58, 128 }
 0x1a4   : > { %2498 = vxpose.xlu1.b32.cont [12/16] %v2497_v59, 128 }
 0x1a8   : > { %2500 = vxpose.xlu1.b32.cont [13/16] %v2499_v42, 128 }
 0x1ac   : > { %2502 = vxpose.xlu1.b32.cont [14/16] %v2501_v44, 128 }
 0x1b0   : > { %2504 = vxpose.xlu1.b32.cont [15/16] %v2503_v61, 128 }
 0x1b4   : > { %2506 = vxpose.xlu1.b32.end [16/16] %v2505_v29, 128 }
 0x1b8   : > { %v2395_v16 = vpop.trf.xlu0 }
 0x1b9   : > { %v2399_v17 = vunpack.i.h.bf16 %v2395_v16  ;;  %v2396_v24 = vunpack.i.l.bf16 %v2395_v16 }
 0x1bc   : > { %v2400_v28 = vpop.trf.xlu0 }
 0x1bd   : > { %v2404_v32 = vunpack.i.h.bf16 %v2400_v28  ;;  %v2401_v36 = vunpack.i.l.bf16 %v2400_v28 }
 0x1bf   : > { %v2079_v37 = vpack.c.bf16 %v2401_v36, %v2396_v24  ;;  %v2119_v39 = vpack.c.bf16 %v2404_v32, %v2399_v17 }
 0x1c0   : > { %v2405_v46 = vpop.trf.xlu0 }
 0x1c1   : > { %2080 = vst [vmem:[%s3403_s17] sm:$0xff] %v2079_v37   ;;  %2243 = vst [vmem:[%s3403_s17 + $0x40] sm:$0xff] %v2119_v39   ;;  %v2409_v50 = vunpack.i.h.bf16 %v2405_v46  ;;  %v2406_v54 = vunpack.i.l.bf16 %v2405_v46 }
 0x1c4   : > { %v2410_v58 = vpop.trf.xlu0 }
 0x1c5   : > { %v2414_v60 = vunpack.i.h.bf16 %v2410_v58  ;;  %v2411_v59 = vunpack.i.l.bf16 %v2410_v58 }
 0x1c7   : > { %v2084_v26 = vpack.c.bf16 %v2411_v59, %v2406_v54  ;;  %v2124_v30 = vpack.c.bf16 %v2414_v60, %v2409_v50 }
 0x1c8   : > { %v2415_v35 = vpop.trf.xlu0 }
 0x1c9   : > { %2236 = vst [vmem:[%s3403_s17 + $0x8] sm:$0xff] %v2084_v26   ;;  %2244 = vst [vmem:[%s3403_s17 + $0x48] sm:$0xff] %v2124_v30   ;;  %v2419_v42 = vunpack.i.h.bf16 %v2415_v35  ;;  %v2416_v43 = vunpack.i.l.bf16 %v2415_v35 }
 0x1cc   : > { %v2420_v44 = vpop.trf.xlu0 }
 0x1cd   : > { %v2424_v53 = vunpack.i.h.bf16 %v2420_v44  ;;  %v2421_v57 = vunpack.i.l.bf16 %v2420_v44 }
 0x1cf   : > { %v2089_v21 = vpack.c.bf16 %v2421_v57, %v2416_v43  ;;  %v2129_v61 = vpack.c.bf16 %v2424_v53, %v2419_v42 }
 0x1d0   : > { %v2425_v27 = vpop.trf.xlu0 }
 0x1d1   : > { %2237 = vst [vmem:[%s3403_s17 + $0x10] sm:$0xff] %v2089_v21   ;;  %2245 = vst [vmem:[%s3403_s17 + $0x50] sm:$0xff] %v2129_v61   ;;  %v2429_v29 = vunpack.i.h.bf16 %v2425_v27  ;;  %v2426_v56 = vunpack.i.l.bf16 %v2425_v27 }
 0x1d4   : > { %v2430_v18 = vpop.trf.xlu0 }
 0x1d5   : > { %v2434_v4 = vunpack.i.h.bf16 %v2430_v18  ;;  %v2431_v20 = vunpack.i.l.bf16 %v2430_v18 }
 0x1d7   : > { %v2094_v13 = vpack.c.bf16 %v2431_v20, %v2426_v56  ;;  %v2134_v22 = vpack.c.bf16 %v2434_v4, %v2429_v29 }
 0x1d8   : > { %v2435_v7 = vpop.trf.xlu0 }
 0x1d9   : > { %2238 = vst [vmem:[%s3403_s17 + $0x18] sm:$0xff] %v2094_v13   ;;  %2246 = vst [vmem:[%s3403_s17 + $0x58] sm:$0xff] %v2134_v22   ;;  %v2439_v19 = vunpack.i.h.bf16 %v2435_v7  ;;  %v2436_v10 = vunpack.i.l.bf16 %v2435_v7 }
 0x1dc   : > { %v2440_v2 = vpop.trf.xlu0 }
 0x1dd   : > { %v2444_v23 = vunpack.i.h.bf16 %v2440_v2  ;;  %v2441_v1 = vunpack.i.l.bf16 %v2440_v2 }
 0x1df   : > { %v2099_v31 = vpack.c.bf16 %v2441_v1, %v2436_v10  ;;  %v2139_v34 = vpack.c.bf16 %v2444_v23, %v2439_v19 }
 0x1e0   : > { %v2445_v38 = vpop.trf.xlu0 }
 0x1e1   : > { %2239 = vst [vmem:[%s3403_s17 + $0x20] sm:$0xff] %v2099_v31   ;;  %2247 = vst [vmem:[%s3403_s17 + $0x60] sm:$0xff] %v2139_v34   ;;  %v2449_v5 = vunpack.i.h.bf16 %v2445_v38  ;;  %v2446_v14 = vunpack.i.l.bf16 %v2445_v38 }
 0x1e4   : > { %v2450_v25 = vpop.trf.xlu0 }
 0x1e5   : > { %v2454_v40 = vunpack.i.h.bf16 %v2450_v25  ;;  %v2451_v11 = vunpack.i.l.bf16 %v2450_v25 }
 0x1e7   : > { %v2104_v3 = vpack.c.bf16 %v2451_v11, %v2446_v14  ;;  %v2144_v8 = vpack.c.bf16 %v2454_v40, %v2449_v5 }
 0x1e8   : > { %v2455_v33 = vpop.trf.xlu0 }
 0x1e9   : > { %2240 = vst [vmem:[%s3403_s17 + $0x28] sm:$0xff] %v2104_v3   ;;  %2248 = vst [vmem:[%s3403_s17 + $0x68] sm:$0xff] %v2144_v8   ;;  %v2459_v41 = vunpack.i.h.bf16 %v2455_v33  ;;  %v2456_v0 = vunpack.i.l.bf16 %v2455_v33 }
 0x1ec   : > { %v2460_v62 = vpop.trf.xlu0 }
 0x1ed   : > { %v2464_v15 = vunpack.i.h.bf16 %v2460_v62  ;;  %v2461_v45 = vunpack.i.l.bf16 %v2460_v62 }
 0x1ef   : > { %v2109_v47 = vpack.c.bf16 %v2461_v45, %v2456_v0  ;;  %v2149_v48 = vpack.c.bf16 %v2464_v15, %v2459_v41 }
 0x1f0   : > { %v2465_v49 = vpop.trf.xlu0 }
 0x1f1   : > { %2241 = vst [vmem:[%s3403_s17 + $0x30] sm:$0xff] %v2109_v47   ;;  %2249 = vst [vmem:[%s3403_s17 + $0x70] sm:$0xff] %v2149_v48   ;;  %v2469_v6 = vunpack.i.h.bf16 %v2465_v49  ;;  %v2466_v12 = vunpack.i.l.bf16 %v2465_v49 }
 0x1f4   : > { %v2470_v9 = vpop.trf.xlu0 }
 0x1f5   : > { %v2474_v51 = vunpack.i.h.bf16 %v2470_v9  ;;  %v2471_v52 = vunpack.i.l.bf16 %v2470_v9 }
 0x1f7   : > { %v2114_v63 = vpack.c.bf16 %v2471_v52, %v2466_v12  ;;  %v2154_v55 = vpack.c.bf16 %v2474_v51, %v2469_v6 }
 0x1f8   : > { %v2507_v16 = vpop.trf.xlu1 }
 0x1f9   : > { %2242 = vst [vmem:[%s3403_s17 + $0x38] sm:$0xff] %v2114_v63   ;;  %2250 = vst [vmem:[%s3403_s17 + $0x78] sm:$0xff] %v2154_v55  }
 0x1fa   : > { %2654 = shalt.err (!%p2651_p5)
}
 0x1fb   : > { %s2655_s17 = scalar_lea.hbm %s3427_s29, 2048  ;;  %s2659_s13 = scalar_lea.hbm %s3575_s3, 4096 }
 0x1fc   : > { %p2656_p4 = scmp.ne.s32.totalorder %s3427_s29, %s2655_s17  ;;  %p2660_p12 = scmp.lt.u32.totalorder %s3427_s29, %s3575_s3 }
 0x1fd   : > { %p2661_p1 = scmp.lt.u32.totalorder %s2659_s13, %s2655_s17  ;;  %p2663_p8 = scmp.lt.u32.totalorder %s2655_s17, %s3427_s29 }
 0x1fe   : > { %p2657_p7 = pnand %p2656_p4, %p3586_p9 }
 0x1ff   : > { %p2662_p3 = por %p2661_p1, %p2660_p12 }
 0x200   : > { %p2658_p10 = pneg %p2657_p7 }
 0x201   : > { %p2664_p11 = por %p2663_p8, %p2662_p3 }
 0x203   : > { %p2665_p0 = pnand %p2664_p11, %p2658_p10 }
 0x205   : > { %2668 = shalt.err (!%p2665_p0)
}
 0x206   : > { %s2790_s28 = smov 64   ;;  %s2791_s30 = smov 4   ;;  %v2511_v17 = vunpack.i.h.bf16 %v2507_v16  ;;  %v2508_v24 = vunpack.i.l.bf16 %v2507_v16  ;;  %v2512_v28 = vpop.trf.xlu1 }
 0x207   : > { %2284 = dma.vmem_to_hbm [thread:$0]  (%p3586_p9), %s3429_s15, 2048, %s3427_s29, %s1650_s21, %s2790_s28, %s2790_s28, %s2791_s30   ;;  %v2516_v32 = vunpack.i.h.bf16 %v2512_v28  ;;  %v2513_v36 = vunpack.i.l.bf16 %v2512_v28 }
 0x208   : > { %s3461_s25 = scalar_lea.vmem [#allocation6], %s3325_s14  ;;  %s1654_s12 = sand.u32 1, %s2857_s24  }
 0x209   : > { %v2159_v37 = vpack.c.bf16 %v2513_v36, %v2508_v24  ;;  %v2199_v39 = vpack.c.bf16 %v2516_v32, %v2511_v17  ;;  %s1693_s14 = sshll.u32 %s3461_s25, 4  ;;  %s1711_s15 = sshll.u32 %s3332_s16, 4  ;;  %s3492_s14 = int_to_ptr.vmem [resolvable:$true] %s1693_s14  ;;  %s3494_s15 = int_to_ptr.vmem [resolvable:$true] %s1711_s15 }
 0x20a   : > { %v2517_v46 = vpop.trf.xlu1  ;;  %s3484_s17 = scalar_lea.hbm %s3576_s4, %s3420_s27  ;;  %s3490_s13 = scalar_lea.hbm %s3577_s5, %s3420_s27 }
 0x20b   : > { %2160 = vst [vmem:[%s3461_s25] sm:$0xff] %v2159_v37   ;;  %2258 = vst [vmem:[%s3461_s25 + $0x40] sm:$0xff] %v2199_v39   ;;  %v2521_v50 = vunpack.i.h.bf16 %v2517_v46  ;;  %v2518_v54 = vunpack.i.l.bf16 %v2517_v46  ;;  %s3498_s24 = scalar_lea.sflag [#allocation7], %s1654_s12  ;;  %s2669_s16 = scalar_lea.vmem %s3492_s14, 2048 }
 0x20c   : > { %p2670_p6 = scmp.ne.s32.totalorder %s3492_s14, %s2669_s16  ;;  %s2792_s27 = smov [#allocation6]  }
 0x20d   : > { %s2673_s9 = sshll.u32 %s2792_s27, 4  ;;  %s2674_s9 = int_to_ptr.vmem [resolvable:$false] %s2673_s9 }
 0x20e   : > { %v2522_v58 = vpop.trf.xlu1  ;;  %p2671_p13 = pnand %p2670_p6, %p3586_p9  ;;  %s2675_s29 = scalar_lea.vmem %s2674_s9, 4096 }
 0x20f   : > { %v2526_v60 = vunpack.i.h.bf16 %v2522_v58  ;;  %v2523_v59 = vunpack.i.l.bf16 %v2522_v58  ;;  %p2676_p5 = scmp.lt.s32.totalorder %s3492_s14, %s2674_s9  ;;  %p2677_p4 = scmp.lt.s32.totalorder %s2675_s29, %s2669_s16 }
 0x210   : > { %p2672_p2 = pneg %p2671_p13 }
 0x211   : > { %v2164_v26 = vpack.c.bf16 %v2523_v59, %v2518_v54  ;;  %v2204_v30 = vpack.c.bf16 %v2526_v60, %v2521_v50  ;;  %p2678_p7 = por %p2677_p4, %p2676_p5 }
 0x212   : > { %v2527_v35 = vpop.trf.xlu1 }
 0x213   : > { %2251 = vst [vmem:[%s3461_s25 + $0x8] sm:$0xff] %v2164_v26   ;;  %2259 = vst [vmem:[%s3461_s25 + $0x48] sm:$0xff] %v2204_v30   ;;  %v2531_v42 = vunpack.i.h.bf16 %v2527_v35  ;;  %v2528_v43 = vunpack.i.l.bf16 %v2527_v35  ;;  %p2679_p10 = pnand %p2678_p7, %p2672_p2 }
 0x216   : > { %v2532_v44 = vpop.trf.xlu1 }
 0x217   : > { %v2536_v53 = vunpack.i.h.bf16 %v2532_v44  ;;  %v2533_v57 = vunpack.i.l.bf16 %v2532_v44 }
 0x219   : > { %v2169_v21 = vpack.c.bf16 %v2533_v57, %v2528_v43  ;;  %v2209_v61 = vpack.c.bf16 %v2536_v53, %v2531_v42 }
 0x21a   : > { %v2537_v27 = vpop.trf.xlu1 }
 0x21b   : > { %2252 = vst [vmem:[%s3461_s25 + $0x10] sm:$0xff] %v2169_v21   ;;  %2260 = vst [vmem:[%s3461_s25 + $0x50] sm:$0xff] %v2209_v61   ;;  %v2541_v29 = vunpack.i.h.bf16 %v2537_v27  ;;  %v2538_v56 = vunpack.i.l.bf16 %v2537_v27 }
 0x21e   : > { %v2542_v18 = vpop.trf.xlu1 }
 0x21f   : > { %v2546_v4 = vunpack.i.h.bf16 %v2542_v18  ;;  %v2543_v20 = vunpack.i.l.bf16 %v2542_v18 }
 0x221   : > { %v2174_v13 = vpack.c.bf16 %v2543_v20, %v2538_v56  ;;  %v2214_v22 = vpack.c.bf16 %v2546_v4, %v2541_v29 }
 0x222   : > { %v2547_v7 = vpop.trf.xlu1 }
 0x223   : > { %2253 = vst [vmem:[%s3461_s25 + $0x18] sm:$0xff] %v2174_v13   ;;  %2261 = vst [vmem:[%s3461_s25 + $0x58] sm:$0xff] %v2214_v22   ;;  %v2551_v19 = vunpack.i.h.bf16 %v2547_v7  ;;  %v2548_v10 = vunpack.i.l.bf16 %v2547_v7 }
 0x226   : > { %v2552_v2 = vpop.trf.xlu1 }
 0x227   : > { %v2556_v23 = vunpack.i.h.bf16 %v2552_v2  ;;  %v2553_v1 = vunpack.i.l.bf16 %v2552_v2 }
 0x229   : > { %v2179_v31 = vpack.c.bf16 %v2553_v1, %v2548_v10  ;;  %v2219_v34 = vpack.c.bf16 %v2556_v23, %v2551_v19 }
 0x22a   : > { %v2557_v38 = vpop.trf.xlu1 }
 0x22b   : > { %2254 = vst [vmem:[%s3461_s25 + $0x20] sm:$0xff] %v2179_v31   ;;  %2262 = vst [vmem:[%s3461_s25 + $0x60] sm:$0xff] %v2219_v34   ;;  %v2561_v5 = vunpack.i.h.bf16 %v2557_v38  ;;  %v2558_v14 = vunpack.i.l.bf16 %v2557_v38 }
 0x22e   : > { %v2562_v25 = vpop.trf.xlu1 }
 0x22f   : > { %v2566_v40 = vunpack.i.h.bf16 %v2562_v25  ;;  %v2563_v11 = vunpack.i.l.bf16 %v2562_v25 }
 0x231   : > { %v2184_v3 = vpack.c.bf16 %v2563_v11, %v2558_v14  ;;  %v2224_v8 = vpack.c.bf16 %v2566_v40, %v2561_v5 }
 0x232   : > { %v2567_v33 = vpop.trf.xlu1 }
 0x233   : > { %2255 = vst [vmem:[%s3461_s25 + $0x28] sm:$0xff] %v2184_v3   ;;  %2263 = vst [vmem:[%s3461_s25 + $0x68] sm:$0xff] %v2224_v8   ;;  %v2571_v41 = vunpack.i.h.bf16 %v2567_v33  ;;  %v2568_v0 = vunpack.i.l.bf16 %v2567_v33 }
 0x236   : > { %v2572_v62 = vpop.trf.xlu1 }
 0x237   : > { %v2576_v15 = vunpack.i.h.bf16 %v2572_v62  ;;  %v2573_v45 = vunpack.i.l.bf16 %v2572_v62 }
 0x239   : > { %v2189_v47 = vpack.c.bf16 %v2573_v45, %v2568_v0  ;;  %v2229_v48 = vpack.c.bf16 %v2576_v15, %v2571_v41 }
 0x23a   : > { %v2577_v49 = vpop.trf.xlu1 }
 0x23b   : > { %2256 = vst [vmem:[%s3461_s25 + $0x30] sm:$0xff] %v2189_v47   ;;  %2264 = vst [vmem:[%s3461_s25 + $0x70] sm:$0xff] %v2229_v48   ;;  %v2581_v6 = vunpack.i.h.bf16 %v2577_v49  ;;  %v2578_v12 = vunpack.i.l.bf16 %v2577_v49 }
 0x23e   : > { %v2582_v9 = vpop.trf.xlu1 }
 0x23f   : > { %v2586_v51 = vunpack.i.h.bf16 %v2582_v9  ;;  %v2583_v52 = vunpack.i.l.bf16 %v2582_v9 }
 0x241   : > { %v2194_v63 = vpack.c.bf16 %v2583_v52, %v2578_v12  ;;  %v2234_v55 = vpack.c.bf16 %v2586_v51, %v2581_v6 }
 0x243   : > { %2257 = vst [vmem:[%s3461_s25 + $0x38] sm:$0xff] %v2194_v63   ;;  %2265 = vst [vmem:[%s3461_s25 + $0x78] sm:$0xff] %v2234_v55  }
 0x244   : > { %2682 = shalt.err (!%p2679_p10)
}
 0x245   : > { %s2683_s25 = scalar_lea.hbm %s3484_s17, 2048  ;;  %s2687_s10 = scalar_lea.hbm %s3576_s4, 4096 }
 0x246   : > { %p2684_p12 = scmp.ne.s32.totalorder %s3484_s17, %s2683_s25  ;;  %p2688_p8 = scmp.lt.u32.totalorder %s3484_s17, %s3576_s4 }
 0x247   : > { %p2689_p11 = scmp.lt.u32.totalorder %s2687_s10, %s2683_s25  ;;  %p2691_p6 = scmp.lt.u32.totalorder %s2683_s25, %s3484_s17 }
 0x248   : > { %p2685_p1 = pnand %p2684_p12, %p3586_p9 }
 0x249   : > { %p2690_p0 = por %p2689_p11, %p2688_p8 }
 0x24a   : > { %p2686_p3 = pneg %p2685_p1 }
 0x24b   : > { %p2692_p13 = por %p2691_p6, %p2690_p0 }
 0x24d   : > { %p2693_p2 = pnand %p2692_p13, %p2686_p3 }
 0x24f   : > { %2696 = shalt.err (!%p2693_p2)
}
 0x250   : > { %2285 = dma.vmem_to_hbm [thread:$0]  (%p3586_p9), %s3492_s14, 2048, %s3484_s17, %s3498_s24, %s2790_s28, %s2790_s28, %s2791_s30  }
 0x251   : > { %s2697_s16 = scalar_lea.vmem %s3494_s15, 2048  ;;  %s2793_s9 = smov [#allocation8]  }
 0x252   : > { %p2698_p5 = scmp.ne.s32.totalorder %s3494_s15, %s2697_s16  ;;  %s2701_s29 = sshll.u32 %s2793_s9, 4  ;;  %s2702_s29 = int_to_ptr.vmem [resolvable:$false] %s2701_s29 }
 0x253   : > { %s2703_s25 = scalar_lea.vmem %s2702_s29, 4096  ;;  %p2704_p10 = scmp.lt.s32.totalorder %s3494_s15, %s2702_s29 }
 0x254   : > { %p2699_p4 = pnand %p2698_p5, %p3586_p9  ;;  %p2705_p12 = scmp.lt.s32.totalorder %s2703_s25, %s2697_s16 }
 0x256   : > { %p2700_p7 = pneg %p2699_p4  ;;  %p2706_p1 = por %p2705_p12, %p2704_p10 }
 0x258   : > { %p2707_p3 = pnand %p2706_p1, %p2700_p7 }
 0x25a   : > { %2710 = shalt.err (!%p2707_p3)
}
 0x25b   : > { %s2711_s28 = scalar_lea.hbm %s3490_s13, 2048  ;;  %s2715_s17 = scalar_lea.hbm %s3577_s5, 4096 }
 0x25c   : > { %p2712_p8 = scmp.ne.s32.totalorder %s3490_s13, %s2711_s28  ;;  %p2716_p6 = scmp.lt.u32.totalorder %s3490_s13, %s3577_s5 }
 0x25d   : > { %p2717_p13 = scmp.lt.u32.totalorder %s2715_s17, %s2711_s28  ;;  %p2719_p5 = scmp.lt.u32.totalorder %s2711_s28, %s3490_s13 }
 0x25e   : > { %p2713_p11 = pnand %p2712_p8, %p3586_p9 }
 0x25f   : > { %p2718_p2 = por %p2717_p13, %p2716_p6 }
 0x260   : > { %p2714_p0 = pneg %p2713_p11 }
 0x261   : > { %p2720_p4 = por %p2719_p5, %p2718_p2 }
 0x263   : > { %p2721_p7 = pnand %p2720_p4, %p2714_p0 }
 0x265   : > { %2724 = shalt.err (!%p2721_p7)
}
 0x266   : > { %s2794_s10 = smov 128   ;;  %s2795_s11 = smov 8  }
 0x267   : > { %2286 = dma.vmem_to_hbm [thread:$0]  (%p3586_p9), %s3494_s15, 2048, %s3490_s13, %s3498_s24, %s2794_s10, %s2794_s10, %s2795_s11  }
 0x268 PF: > { %s1726_s27 = sand.u32 1, %s2763_s18   ;;  %p3587_p10 = scmp.ne.s32.totalorder %s3583_s8, 0 }
 0x269   : > { %p3588_p12 = scmp.ge.s32.totalorder %s2783_s23, 2  ;;  %s1727_s16 = scalar_lea.sflag [#allocation4], %s1726_s27 }
 0x26b   : > { %p2295_p1 = pnand %p3588_p12, %p3587_p10 }
 0x26d   : > { %2754 = dma.done.wait (!%p2295_p1), %s1727_s16, 2048  }
 0x26e   : > { %2756 = vsyncadd (!%p2295_p1), %s1727_s16, 4294965248  ;;  %s3589_s9 = sadd.s32 4294967294, %s2783_s23  }
 0x26f   : > { %s1735_s29 = sand.u32 1, %s3589_s9  }
 0x270   : > { %s1736_s25 = scalar_lea.sflag [#allocation7], %s1735_s29 }
 0x271   : > { %2758 = dma.done.wait (!%p2295_p1), %s1736_s25, 4096  }
 0x272   : > { %2760 = vsyncadd (!%p2295_p1), %s1736_s25, 4294963200  ;;  %s25_s23 = sadd.s32 1, %s2783_s23   ;;  %s3590_s18 = smov %s2767_s19 }
 0x273   : > { %p22_p9 = scmp.ge.s32.totalorder %s25_s23, 4   ;;  %s3591_s19 = smov %s2771_s20 }
 0x274   : > { %s3592_s20 = smov %s2888_s7  ;;  %s3593_s21 = smov %s2779_s22 }
 0x275   : > { %s3594_s22 = smov %s3596_s26  ;;  %24 = sbr.rel (!%p22_p9) target bundleno = 8 (0x8), region = 109 }
 0x27c   :  { %1750 = vsyncpa [#allocation3], 1 }
 0x27d   :  { %1752 = vsyncpa [#allocation3 + $0x1], 1 }
 0x27e   :  { %1753 = vsyncpa [#allocation4], 1 }
 0x27f   :  { %1755 = vsyncpa [#allocation4 + $0x1], 1 }
 0x280   :  { %1756 = vsyncpa [#allocation7], 1 }
 0x281   :  { %1758 = vsyncpa [#allocation7 + $0x1], 1 }

</bundles_post_ra>
